<compile_context>
chip_gen: v7x
topology: tpu7x:2x2x1
jax: 0.10.0
libtpu: 0.0.40
codegen_flags: <defaults>
</compile_context>

<pallas_src>
from functools import partial

import numpy as np
import jax
import jax.numpy as jnp
from jax.experimental import pallas as pl
from jax.experimental.pallas import tpu as pltpu


def _round_up(x, m):
    return (x + m - 1) // m * m


# --------------------------------------------------------------------------
# In-kernel helpers (channel-major layout: activations are (C, H*W) f32).
# --------------------------------------------------------------------------
def _conv3x3(pad_ref, w_ref, b_ref, mask_l, mask_r, *, cin, H, W, off, relu):
    """3x3 'same' conv: 9 accumulated (cout,cin)@(cin,HW) MXU dots over shifted
    reads of the zero-haloed scratch. No im2col matrix is materialized.

    pad_ref : scratch; input occupies rows 0:cin, lanes [off, off+HW); the
              (W+1)-lane bands on each side of the interior are zero.
    w_ref   : (9, cout, cin) per-tap weights, tap p = (dh+1)*3 + (dw+1).
    b_ref   : (cout, 1).
    mask_l/r: (1, HW) bool masks for the dw=-1 / dw=+1 horizontal borders.
    """
    HW = H * W
    acc = None
    p = 0
    for dh in (-1, 0, 1):
        for dw in (-1, 0, 1):
            d = dh * W + dw
            s = pad_ref[0:cin, off + d:off + d + HW]          # x[:, hw+d] or halo 0
            if dw == -1:
                s = jnp.where(mask_l, s, 0.0)                  # w-1 >= 0
            elif dw == 1:
                s = jnp.where(mask_r, s, 0.0)                  # w+1 <  W
            t = jnp.dot(w_ref[p], s, preferred_element_type=jnp.float32)
            acc = t if acc is None else acc + t
            p += 1
    acc = acc + b_ref[...]
    return jnp.maximum(acc, 0.0) if relu else acc


# --------------------------------------------------------------------------
# Fully fused U-Net forward kernel (one grid step = Nb batch elements).
# --------------------------------------------------------------------------
def _fused_unet_kernel(x_ref, w1_ref, b1_ref, w2_ref, b2_ref, wd_ref, bd_ref,
                       wh_ref, bh_ref, pool_ref, up_ref, o_ref, pad_ref,
                       *, H, W, Nb, off):
    HW = H * W
    H2, W2 = H // 2, W // 2
    HW2 = H2 * W2
    cin = x_ref.shape[1]
    c1 = w1_ref.shape[1]          # base
    c2 = w2_ref.shape[1]          # 2*base
    c_cat = c1 + c2

    # Hoisted once per grid step and reused across all taps / convs / images.
    colf = jax.lax.broadcasted_iota(jnp.int32, (1, HW), 1) % W
    mlf, mrf = colf >= 1, colf < (W - 1)
    colh = jax.lax.broadcasted_iota(jnp.int32, (1, HW2), 1) % W2
    mlh, mrh = colh >= 1, colh < (W2 - 1)

    z_in = jnp.zeros((cin, W + 1), jnp.float32)
    z_c1f = jnp.zeros((c1, W + 1), jnp.float32)
    z_c1h = jnp.zeros((c1, W2 + 1), jnp.float32)
    z_c2f = jnp.zeros((c2, W + 1), jnp.float32)
    z_cat = jnp.zeros((c_cat, W + 1), jnp.float32)

    for b in range(Nb):           # Nb images per grid step amortize fixed cost
        # ---- encoder stage 1: 3x3 conv + ReLU --------------------------------
        pad_ref[0:cin, off - (W + 1):off] = z_in
        pad_ref[0:cin, off + HW:off + HW + (W + 1)] = z_in
        pad_ref[0:cin, off:off + HW] = x_ref[b]
        e1 = _conv3x3(pad_ref, w1_ref, b1_ref, mlf, mrf,
                      cin=cin, H=H, W=W, off=off, relu=True)          # (c1, HW)

        # Stash e1 at its final skip-connection rows; this single aligned store
        # also serves as the maxpool source.
        pad_ref[c2:c_cat, off:off + HW] = e1
        pad_ref[c2:c_cat, off + HW:off + HW + (W + 1)] = z_c1f  # finite/zero tail

        # ---- fused 2x2 / stride-2 maxpool: 4 shifted reads + anchor gather ----
        s00 = pad_ref[c2:c_cat, off:off + HW]
        s01 = pad_ref[c2:c_cat, off + 1:off + 1 + HW]
        s10 = pad_ref[c2:c_cat, off + W:off + W + HW]
        s11 = pad_ref[c2:c_cat, off + W + 1:off + W + 1 + HW]
        m = jnp.maximum(jnp.maximum(s00, s01), jnp.maximum(s10, s11))
        # 0/1 matrix picks the even-(h,w) anchors -> (c1, HW//4)
        p1 = jnp.dot(m, pool_ref[...], preferred_element_type=jnp.float32)

        # ---- encoder stage 2 (bottleneck): 3x3 conv + ReLU at half res --------
        pad_ref[0:c1, off - (W2 + 1):off] = z_c1h
        pad_ref[0:c1, off + HW2:off + HW2 + (W2 + 1)] = z_c1h
        pad_ref[0:c1, off:off + HW2] = p1
        e2 = _conv3x3(pad_ref, w2_ref, b2_ref, mlh, mrh,
                      cin=c1, H=H2, W=W2, off=off, relu=True)         # (c2, HW2)

        # ---- nearest-neighbour 2x upsample as a 0/1 gather matmul -------------
        u1 = jnp.dot(e2, up_ref[...], preferred_element_type=jnp.float32)   # (c2, HW)

        # ---- decoder conv on concat([u1, e1]) ----------------------------------
        # u1 -> rows 0:c2 (e1 already resides in rows c2:c_cat); only the halo
        # bands actually read by the conv are (re)zeroed.
        pad_ref[0:c2, off:off + HW] = u1
        pad_ref[0:c_cat, off - (W + 1):off] = z_cat
        pad_ref[0:c2, off + HW:off + HW + (W + 1)] = z_c2f
        d1 = _conv3x3(pad_ref, wd_ref, bd_ref, mlf, mrf,
                      cin=c_cat, H=H, W=W, off=off, relu=True)        # (c1, HW)

        # ---- fused 1x1 segmentation head (activation=None), lane-dense store --
        out = jnp.dot(wh_ref[...], d1, preferred_element_type=jnp.float32) + bh_ref[...]
        o_ref[b] = out.astype(o_ref.dtype)


# --------------------------------------------------------------------------
# Wrapper: weight prep (per-tap layout), gather matrices, Nb/grid selection.
# --------------------------------------------------------------------------
def _to_taps(w, cin_pad=None):
    """(KH, KW, Cin, Cout) -> (KH*KW, Cout, Cin[_pad]) per-tap layout."""
    kh, kw, cin, cout = w.shape
    if cin_pad is not None and cin_pad != cin:
        w = jnp.pad(w, ((0, 0), (0, 0), (0, cin_pad - cin), (0, 0)))
        cin = cin_pad
    return jnp.transpose(w, (0, 1, 3, 2)).reshape(kh * kw, cout, cin)


def _pool_gather_matrix(H, W):
    """(HW, HW//4) 0/1 matrix selecting the even-(h,w) pooling anchors."""
    Ho, Wo = H // 2, W // 2
    hw = np.arange(H * W)[:, None]
    j = np.arange(Ho * Wo)[None, :]
    anchor = (j // Wo) * (2 * W) + (j % Wo) * 2
    return jnp.asarray((hw == anchor).astype(np.float32))


def _upsample_gather_matrix(H, W):
    """(HW//4, HW) 0/1 matrix: nearest-neighbour 2x upsample as a gather."""
    Ho, Wo = H // 2, W // 2
    j = np.arange(Ho * Wo)[:, None]
    hw = np.arange(H * W)[None, :]
    src = (hw // W // 2) * Wo + (hw % W) // 2
    return jnp.asarray((j == src).astype(np.float32))


def _pick_images_per_step(N, max_nb=8):
    """Largest divisor Nb of N with Nb <= max_nb and N // Nb >= 2 (keeps the
    grid long enough for v7x's two TensorCores); falls back to 1."""
    if N <= 2:
        return 1
    best = 1
    for nb in range(1, min(max_nb, N // 2) + 1):
        if N % nb == 0:
            best = nb
    return best


def custom_model_forward(params, image_nchw, *, max_images_per_step=8):
    """NCHW in / NCHW out (PyTorch convention); channel-major inside the kernel."""
    N, Cin, H, W = image_nchw.shape
    assert H % 2 == 0 and W % 2 == 0, "spatial dims must be even (one 2x pool stage)"
    HW = H * W
    base = params["enc1_w"].shape[-1]
    c1, c2 = base, 2 * base
    c_cat = c1 + c2
    tgt = params["head_w"].shape[-1]

    # Pad input channels to a multiple of 8 sublanes (zero channels x zero
    # weight columns -> identical math, aligned full-vreg stores in-kernel).
    cin_pad = max(8, _round_up(Cin, 8))
    x = image_nchw.reshape(N, Cin, HW)          # NCHW is already channel-major
    if cin_pad != Cin:
        x = jnp.pad(x, ((0, 0), (0, cin_pad - Cin), (0, 0)))

    w1 = _to_taps(params["enc1_w"], cin_pad)    # (9, c1, cin_pad)
    b1 = params["enc1_b"].reshape(c1, 1)
    w2 = _to_taps(params["enc2_w"])             # (9, c2, c1)
    b2 = params["enc2_b"].reshape(c2, 1)
    wd = _to_taps(params["dec1_w"])             # (9, c1, c_cat)
    bd = params["dec1_b"].reshape(c1, 1)
    wh = params["head_w"][0, 0].T               # (tgt, c1)
    bh = params["head_b"].reshape(tgt, 1)

    pool_g = _pool_gather_matrix(H, W)          # (HW, HW//4) compile-time const
    up_g = _upsample_gather_matrix(H, W)        # (HW//4, HW) compile-time const

    # Interior of the halo scratch starts at a 128-aligned lane so the big
    # activation stores are unmasked; generous tail headroom (no exact-edge reads).
    off = max(128, _round_up(W + 1, 128))
    pad_w = _round_up(off + HW + W + 1, 128)
    pad_rows = _round_up(max(c_cat, cin_pad), 8)

    nb = _pick_images_per_step(N, max_images_per_step)
    grid = (N // nb,)

    kernel = partial(_fused_unet_kernel, H=H, W=W, Nb=nb, off=off)
    c2d = lambda n: (0, 0)
    c3d = lambda n: (0, 0, 0)

    out = pl.pallas_call(
        kernel,
        out_shape=jax.ShapeDtypeStruct((N, tgt, HW), jnp.float32),
        grid=grid,
        in_specs=[
            pl.BlockSpec((nb, cin_pad, HW), lambda n: (n, 0, 0)),
            pl.BlockSpec(w1.shape, c3d), pl.BlockSpec(b1.shape, c2d),
            pl.BlockSpec(w2.shape, c3d), pl.BlockSpec(b2.shape, c2d),
            pl.BlockSpec(wd.shape, c3d), pl.BlockSpec(bd.shape, c2d),
            pl.BlockSpec(wh.shape, c2d), pl.BlockSpec(bh.shape, c2d),
            pl.BlockSpec(pool_g.shape, c2d), pl.BlockSpec(up_g.shape, c2d),
        ],
        out_specs=pl.BlockSpec((nb, tgt, HW), lambda n: (n, 0, 0)),
        scratch_shapes=[pltpu.VMEM((pad_rows, pad_w), jnp.float32)],  # zero-halo buffer
        compiler_params=pltpu.CompilerParams(dimension_semantics=("parallel",)),
    )(x, w1, b1, w2, b2, wd, bd, wh, bh, pool_g, up_g)

    return out.reshape(N, tgt, H, W)


# --------------------------------------------------------------------------
# Parameters (deterministic, He-style init).
# --------------------------------------------------------------------------
def init_params(key, in_chans=4, base=8, target_size=1):
    ks = jax.random.split(key, 8)

    def conv_w(k, kh, kw, cin, cout):
        fan_in = kh * kw * cin
        return jax.random.normal(k, (kh, kw, cin, cout), jnp.float32) * (2.0 / fan_in) ** 0.5

    def conv_b(k, cout):
        return jax.random.normal(k, (cout,), jnp.float32) * 0.01

    return {
        "enc1_w": conv_w(ks[0], 3, 3, in_chans, base),
        "enc1_b": conv_b(ks[1], base),
        "enc2_w": conv_w(ks[2], 3, 3, base, 2 * base),
        "enc2_b": conv_b(ks[3], 2 * base),
        "dec1_w": conv_w(ks[4], 3, 3, 3 * base, base),
        "dec1_b": conv_b(ks[5], base),
        "head_w": conv_w(ks[6], 1, 1, base, target_size),
        "head_b": conv_b(ks[7], target_size),
    }


# --------------------------------------------------------------------------
# Pure-JAX reference (NHWC) for a numerical self-check.
# --------------------------------------------------------------------------
def _ref_conv_same(x, w, b, relu):
    N, H, W, cin = x.shape
    KH, KW, _, cout = w.shape
    ph, pw = KH // 2, KW // 2
    xp = jnp.pad(x, ((0, 0), (ph, ph), (pw, pw), (0, 0)))
    acc = jnp.zeros((N, H, W, cout), jnp.float32)
    for kh in range(KH):
        for kw in range(KW):
            acc = acc + jnp.einsum("nhwc,co->nhwo", xp[:, kh:kh + H, kw:kw + W, :],
                                   w[kh, kw], precision=jax.lax.Precision.HIGHEST)
    acc = acc + b
    return jnp.maximum(acc, 0.0) if relu else acc


def _reference_forward(params, image_nchw):
    x = jnp.transpose(image_nchw, (0, 2, 3, 1))
    e1 = _ref_conv_same(x, params["enc1_w"], params["enc1_b"], relu=True)
    N, H, W, c1 = e1.shape
    p1 = e1.reshape(N, H // 2, 2, W // 2, 2, c1).max(axis=(2, 4))
    e2 = _ref_conv_same(p1, params["enc2_w"], params["enc2_b"], relu=True)
    u1 = jnp.repeat(jnp.repeat(e2, 2, axis=1), 2, axis=2)
    cat = jnp.concatenate([u1, e1], axis=-1)
    d1 = _ref_conv_same(cat, params["dec1_w"], params["dec1_b"], relu=True)
    out = _ref_conv_same(d1, params["head_w"], params["head_b"], relu=False)
    return jnp.transpose(out, (0, 3, 1, 2))


if __name__ == "__main__":
    key = jax.random.PRNGKey(0)
    pkey, xkey = jax.random.split(key)

    # cfg: in_chans=4, target_size=1, batch=2, spatial=16x16
    params = init_params(pkey, in_chans=4, base=8, target_size=1)
    image = jax.random.normal(xkey, (2, 4, 16, 16), jnp.float32)

    fwd = jax.jit(custom_model_forward)
    y = fwd(params, image)
    jax.block_until_ready(y)

    assert y.shape == (2, 1, 16, 16), y.shape
    assert y.dtype == jnp.float32

    y_ref = _reference_forward(params, image)
    err = float(jnp.max(jnp.abs(y - y_ref)))
    assert jnp.allclose(y, y_ref, atol=2e-2, rtol=2e-2), f"max abs err {err}"

    print("KERNEL_OK")
</pallas_src>

<mosaic_0001>
module attributes {stable_mosaic.version = 11 : i64} {
  func.func @_fused_unet_kernel(%arg0: i32, %arg1: memref<1x8x256xf32, #tpu.memory_space<vmem>>, %arg2: memref<9x8x8xf32, #tpu.memory_space<vmem>>, %arg3: memref<8x1xf32, #tpu.memory_space<vmem>>, %arg4: memref<9x16x8xf32, #tpu.memory_space<vmem>>, %arg5: memref<16x1xf32, #tpu.memory_space<vmem>>, %arg6: memref<9x8x24xf32, #tpu.memory_space<vmem>>, %arg7: memref<8x1xf32, #tpu.memory_space<vmem>>, %arg8: memref<1x8xf32, #tpu.memory_space<vmem>>, %arg9: memref<1x1xf32, #tpu.memory_space<vmem>>, %arg10: memref<256x64xf32, #tpu.memory_space<vmem>>, %arg11: memref<64x256xf32, #tpu.memory_space<vmem>>, %arg12: memref<1x1x256xf32, #tpu.memory_space<vmem>>, %arg13: memref<24x512xf32, #tpu.memory_space<vmem>>) attributes {dimension_semantics = [#tpu.dimension_semantics<parallel>], iteration_bounds = array<i64: 2>, scalar_prefetch = 0 : i64, scratch_operands = 1 : i64, tpu.core_type = #tpu.core_type<tc>, window_params = [{transform_indices = @transform_0, window_bounds = array<i64: 1, 8, 256>}, {pipeline_mode = #tpu.pipeline_mode<synchronous>, transform_indices = @transform_1, window_bounds = array<i64: 9, 8, 8>}, {pipeline_mode = #tpu.pipeline_mode<synchronous>, transform_indices = @transform_2, window_bounds = array<i64: 8, 1>}, {pipeline_mode = #tpu.pipeline_mode<synchronous>, transform_indices = @transform_3, window_bounds = array<i64: 9, 16, 8>}, {pipeline_mode = #tpu.pipeline_mode<synchronous>, transform_indices = @transform_4, window_bounds = array<i64: 16, 1>}, {pipeline_mode = #tpu.pipeline_mode<synchronous>, transform_indices = @transform_5, window_bounds = array<i64: 9, 8, 24>}, {pipeline_mode = #tpu.pipeline_mode<synchronous>, transform_indices = @transform_6, window_bounds = array<i64: 8, 1>}, {pipeline_mode = #tpu.pipeline_mode<synchronous>, transform_indices = @transform_7, window_bounds = array<i64: 1, 8>}, {pipeline_mode = #tpu.pipeline_mode<synchronous>, transform_indices = @transform_8, window_bounds = array<i64: 1, 1>}, {pipeline_mode = #tpu.pipeline_mode<synchronous>, transform_indices = @transform_9, window_bounds = array<i64: 256, 64>}, {pipeline_mode = #tpu.pipeline_mode<synchronous>, transform_indices = @transform_10, window_bounds = array<i64: 64, 256>}, {transform_indices = @transform_11, window_bounds = array<i64: 1, 1, 256>}]} {
    %0 = tpu.iota {dimensions = array<i32: 1>} : vector<1x256xi32>
    %c16_i32 = arith.constant 16 : i32
    %c0_i32 = arith.constant 0 : i32
    %1 = arith.cmpi eq, %c16_i32, %c0_i32 : i32
    %c1_i32 = arith.constant 1 : i32
    %2 = arith.select %1, %c1_i32, %c16_i32 : i32
    %3 = vector.broadcast %2 : i32 to vector<1x256xi32>
    %4 = arith.remsi %0, %3 : vector<1x256xi32>
    %c0_i32_0 = arith.constant 0 : i32
    %5 = vector.broadcast %c0_i32_0 : i32 to vector<1x256xi32>
    %6 = arith.cmpi ne, %4, %5 : vector<1x256xi32>
    %c0_i32_1 = arith.constant 0 : i32
    %7 = vector.broadcast %c0_i32_1 : i32 to vector<1x256xi32>
    %8 = arith.cmpi slt, %4, %7 : vector<1x256xi32>
    %c0_i32_2 = arith.constant 0 : i32
    %9 = arith.cmpi slt, %2, %c0_i32_2 : i32
    %10 = vector.broadcast %9 : i1 to vector<1x256xi1>
    %11 = vector.broadcast %10 : vector<1x256xi1> to vector<1x256xi1>
    %12 = arith.xori %8, %11 : vector<1x256xi1>
    %13 = arith.andi %12, %6 : vector<1x256xi1>
    %14 = vector.broadcast %2 : i32 to vector<1x256xi32>
    %15 = arith.addi %4, %14 : vector<1x256xi32>
    %16 = arith.select %13, %15, %4 : vector<1x256xi1>, vector<1x256xi32>
    %c1_i32_3 = arith.constant 1 : i32
    %17 = vector.broadcast %c1_i32_3 : i32 to vector<1x256xi32>
    %18 = arith.cmpi sge, %16, %17 : vector<1x256xi32>
    %c15_i32 = arith.constant 15 : i32
    %19 = vector.broadcast %c15_i32 : i32 to vector<1x256xi32>
    %20 = arith.cmpi slt, %16, %19 : vector<1x256xi32>
    %21 = tpu.iota {dimensions = array<i32: 1>} : vector<1x64xi32>
    %c8_i32 = arith.constant 8 : i32
    %c0_i32_4 = arith.constant 0 : i32
    %22 = arith.cmpi eq, %c8_i32, %c0_i32_4 : i32
    %c1_i32_5 = arith.constant 1 : i32
    %23 = arith.select %22, %c1_i32_5, %c8_i32 : i32
    %24 = vector.broadcast %23 : i32 to vector<1x64xi32>
    %25 = arith.remsi %21, %24 : vector<1x64xi32>
    %c0_i32_6 = arith.constant 0 : i32
    %26 = vector.broadcast %c0_i32_6 : i32 to vector<1x64xi32>
    %27 = arith.cmpi ne, %25, %26 : vector<1x64xi32>
    %c0_i32_7 = arith.constant 0 : i32
    %28 = vector.broadcast %c0_i32_7 : i32 to vector<1x64xi32>
    %29 = arith.cmpi slt, %25, %28 : vector<1x64xi32>
    %c0_i32_8 = arith.constant 0 : i32
    %30 = arith.cmpi slt, %23, %c0_i32_8 : i32
    %31 = vector.broadcast %30 : i1 to vector<1x64xi1>
    %32 = vector.broadcast %31 : vector<1x64xi1> to vector<1x64xi1>
    %33 = arith.xori %29, %32 : vector<1x64xi1>
    %34 = arith.andi %33, %27 : vector<1x64xi1>
    %35 = vector.broadcast %23 : i32 to vector<1x64xi32>
    %36 = arith.addi %25, %35 : vector<1x64xi32>
    %37 = arith.select %34, %36, %25 : vector<1x64xi1>, vector<1x64xi32>
    %c1_i32_9 = arith.constant 1 : i32
    %38 = vector.broadcast %c1_i32_9 : i32 to vector<1x64xi32>
    %39 = arith.cmpi sge, %37, %38 : vector<1x64xi32>
    %c7_i32 = arith.constant 7 : i32
    %40 = vector.broadcast %c7_i32 : i32 to vector<1x64xi32>
    %41 = arith.cmpi slt, %37, %40 : vector<1x64xi32>
    %cst = arith.constant 0.000000e+00 : f32
    %42 = vector.broadcast %cst : f32 to vector<8x17xf32>
    %cst_10 = arith.constant 0.000000e+00 : f32
    %43 = vector.broadcast %cst_10 : f32 to vector<8x17xf32>
    %cst_11 = arith.constant 0.000000e+00 : f32
    %44 = vector.broadcast %cst_11 : f32 to vector<8x9xf32>
    %cst_12 = arith.constant 0.000000e+00 : f32
    %45 = vector.broadcast %cst_12 : f32 to vector<16x17xf32>
    %cst_13 = arith.constant 0.000000e+00 : f32
    %46 = vector.broadcast %cst_13 : f32 to vector<24x17xf32>
    %c0 = arith.constant 0 : index
    %c111 = arith.constant 111 : index
    %47 = vector.load %arg13[%c0, %c111] : memref<24x512xf32, #tpu.memory_space<vmem>>, vector<8x17xf32>
    tpu.vector_store %arg13[%c0, %c111], %42 {strides = array<i32>} : memref<24x512xf32, #tpu.memory_space<vmem>>, vector<8x17xf32>,
    %c0_14 = arith.constant 0 : index
    %c384 = arith.constant 384 : index
    %48 = vector.load %arg13[%c0_14, %c384] : memref<24x512xf32, #tpu.memory_space<vmem>>, vector<8x17xf32>
    tpu.vector_store %arg13[%c0_14, %c384], %42 {strides = array<i32>} : memref<24x512xf32, #tpu.memory_space<vmem>>, vector<8x17xf32>,
    %c0_15 = arith.constant 0 : index
    %c0_16 = arith.constant 0 : index
    %c0_17 = arith.constant 0 : index
    %49 = vector.load %arg1[%c0_15, %c0_16, %c0_17] : memref<1x8x256xf32, #tpu.memory_space<vmem>>, vector<1x8x256xf32>
    %50 = vector.shape_cast %49 : vector<1x8x256xf32> to vector<8x256xf32>
    %c0_18 = arith.constant 0 : index
    %c128 = arith.constant 128 : index
    %51 = vector.load %arg13[%c0_18, %c128] : memref<24x512xf32, #tpu.memory_space<vmem>>, vector<8x256xf32>
    tpu.vector_store %arg13[%c0_18, %c128], %50 {strides = array<i32>} : memref<24x512xf32, #tpu.memory_space<vmem>>, vector<8x256xf32>,
    %c0_19 = arith.constant 0 : index
    %c111_20 = arith.constant 111 : index
    %52 = vector.load %arg13[%c0_19, %c111_20] : memref<24x512xf32, #tpu.memory_space<vmem>>, vector<8x256xf32>
    %cst_21 = arith.constant 0.000000e+00 : f32
    %53 = vector.shape_cast %18 : vector<1x256xi1> to vector<1x256xi1>
    %54 = vector.broadcast %53 : vector<1x256xi1> to vector<8x256xi1>
    %55 = vector.broadcast %cst_21 : f32 to vector<8x256xf32>
    %56 = arith.select %54, %52, %55 : vector<8x256xi1>, vector<8x256xf32>
    %c0_22 = arith.constant 0 : index
    %c0_23 = arith.constant 0 : index
    %c0_24 = arith.constant 0 : index
    %57 = vector.load %arg2[%c0_22, %c0_23, %c0_24] : memref<9x8x8xf32, #tpu.memory_space<vmem>>, vector<1x8x8xf32>
    %58 = vector.shape_cast %57 : vector<1x8x8xf32> to vector<8x8xf32>
    %cst_25 = arith.constant dense<0.000000e+00> : vector<8x256xf32>
    %59 = tpu.matmul %58, %56, %cst_25 {dimension_numbers = #tpu.dot_dimension_numbers<[1], [0], [0], [1], [0, 0, 1, 1], [], []>} : vector<8x8xf32>, vector<8x256xf32>, vector<8x256xf32> -> vector<8x256xf32>
    %c0_26 = arith.constant 0 : index
    %c112 = arith.constant 112 : index
    %60 = vector.load %arg13[%c0_26, %c112] : memref<24x512xf32, #tpu.memory_space<vmem>>, vector<8x256xf32>
    %c1 = arith.constant 1 : index
    %c0_27 = arith.constant 0 : index
    %c0_28 = arith.constant 0 : index
    %61 = vector.load %arg2[%c1, %c0_27, %c0_28] : memref<9x8x8xf32, #tpu.memory_space<vmem>>, vector<1x8x8xf32>
    %62 = vector.shape_cast %61 : vector<1x8x8xf32> to vector<8x8xf32>
    %cst_29 = arith.constant dense<0.000000e+00> : vector<8x256xf32>
    %63 = tpu.matmul %62, %60, %cst_29 {dimension_numbers = #tpu.dot_dimension_numbers<[1], [0], [0], [1], [0, 0, 1, 1], [], []>} : vector<8x8xf32>, vector<8x256xf32>, vector<8x256xf32> -> vector<8x256xf32>
    %64 = arith.addf %59, %63 : vector<8x256xf32>
    %c0_30 = arith.constant 0 : index
    %c113 = arith.constant 113 : index
    %65 = vector.load %arg13[%c0_30, %c113] : memref<24x512xf32, #tpu.memory_space<vmem>>, vector<8x256xf32>
    %cst_31 = arith.constant 0.000000e+00 : f32
    %66 = vector.shape_cast %20 : vector<1x256xi1> to vector<1x256xi1>
    %67 = vector.broadcast %66 : vector<1x256xi1> to vector<8x256xi1>
    %68 = vector.broadcast %cst_31 : f32 to vector<8x256xf32>
    %69 = arith.select %67, %65, %68 : vector<8x256xi1>, vector<8x256xf32>
    %c2 = arith.constant 2 : index
    %c0_32 = arith.constant 0 : index
    %c0_33 = arith.constant 0 : index
    %70 = vector.load %arg2[%c2, %c0_32, %c0_33] : memref<9x8x8xf32, #tpu.memory_space<vmem>>, vector<1x8x8xf32>
    %71 = vector.shape_cast %70 : vector<1x8x8xf32> to vector<8x8xf32>
    %cst_34 = arith.constant dense<0.000000e+00> : vector<8x256xf32>
    %72 = tpu.matmul %71, %69, %cst_34 {dimension_numbers = #tpu.dot_dimension_numbers<[1], [0], [0], [1], [0, 0, 1, 1], [], []>} : vector<8x8xf32>, vector<8x256xf32>, vector<8x256xf32> -> vector<8x256xf32>
    %73 = arith.addf %64, %72 : vector<8x256xf32>
    %c0_35 = arith.constant 0 : index
    %c127 = arith.constant 127 : index
    %74 = vector.load %arg13[%c0_35, %c127] : memref<24x512xf32, #tpu.memory_space<vmem>>, vector<8x256xf32>
    %cst_36 = arith.constant 0.000000e+00 : f32
    %75 = vector.shape_cast %18 : vector<1x256xi1> to vector<1x256xi1>
    %76 = vector.broadcast %75 : vector<1x256xi1> to vector<8x256xi1>
    %77 = vector.broadcast %cst_36 : f32 to vector<8x256xf32>
    %78 = arith.select %76, %74, %77 : vector<8x256xi1>, vector<8x256xf32>
    %c3 = arith.constant 3 : index
    %c0_37 = arith.constant 0 : index
    %c0_38 = arith.constant 0 : index
    %79 = vector.load %arg2[%c3, %c0_37, %c0_38] : memref<9x8x8xf32, #tpu.memory_space<vmem>>, vector<1x8x8xf32>
    %80 = vector.shape_cast %79 : vector<1x8x8xf32> to vector<8x8xf32>
    %cst_39 = arith.constant dense<0.000000e+00> : vector<8x256xf32>
    %81 = tpu.matmul %80, %78, %cst_39 {dimension_numbers = #tpu.dot_dimension_numbers<[1], [0], [0], [1], [0, 0, 1, 1], [], []>} : vector<8x8xf32>, vector<8x256xf32>, vector<8x256xf32> -> vector<8x256xf32>
    %82 = arith.addf %73, %81 : vector<8x256xf32>
    %c0_40 = arith.constant 0 : index
    %c128_41 = arith.constant 128 : index
    %83 = vector.load %arg13[%c0_40, %c128_41] : memref<24x512xf32, #tpu.memory_space<vmem>>, vector<8x256xf32>
    %c4 = arith.constant 4 : index
    %c0_42 = arith.constant 0 : index
    %c0_43 = arith.constant 0 : index
    %84 = vector.load %arg2[%c4, %c0_42, %c0_43] : memref<9x8x8xf32, #tpu.memory_space<vmem>>, vector<1x8x8xf32>
    %85 = vector.shape_cast %84 : vector<1x8x8xf32> to vector<8x8xf32>
    %cst_44 = arith.constant dense<0.000000e+00> : vector<8x256xf32>
    %86 = tpu.matmul %85, %83, %cst_44 {dimension_numbers = #tpu.dot_dimension_numbers<[1], [0], [0], [1], [0, 0, 1, 1], [], []>} : vector<8x8xf32>, vector<8x256xf32>, vector<8x256xf32> -> vector<8x256xf32>
    %87 = arith.addf %82, %86 : vector<8x256xf32>
    %c0_45 = arith.constant 0 : index
    %c129 = arith.constant 129 : index
    %88 = vector.load %arg13[%c0_45, %c129] : memref<24x512xf32, #tpu.memory_space<vmem>>, vector<8x256xf32>
    %cst_46 = arith.constant 0.000000e+00 : f32
    %89 = vector.shape_cast %20 : vector<1x256xi1> to vector<1x256xi1>
    %90 = vector.broadcast %89 : vector<1x256xi1> to vector<8x256xi1>
    %91 = vector.broadcast %cst_46 : f32 to vector<8x256xf32>
    %92 = arith.select %90, %88, %91 : vector<8x256xi1>, vector<8x256xf32>
    %c5 = arith.constant 5 : index
    %c0_47 = arith.constant 0 : index
    %c0_48 = arith.constant 0 : index
    %93 = vector.load %arg2[%c5, %c0_47, %c0_48] : memref<9x8x8xf32, #tpu.memory_space<vmem>>, vector<1x8x8xf32>
    %94 = vector.shape_cast %93 : vector<1x8x8xf32> to vector<8x8xf32>
    %cst_49 = arith.constant dense<0.000000e+00> : vector<8x256xf32>
    %95 = tpu.matmul %94, %92, %cst_49 {dimension_numbers = #tpu.dot_dimension_numbers<[1], [0], [0], [1], [0, 0, 1, 1], [], []>} : vector<8x8xf32>, vector<8x256xf32>, vector<8x256xf32> -> vector<8x256xf32>
    %96 = arith.addf %87, %95 : vector<8x256xf32>
    %c0_50 = arith.constant 0 : index
    %c143 = arith.constant 143 : index
    %97 = vector.load %arg13[%c0_50, %c143] : memref<24x512xf32, #tpu.memory_space<vmem>>, vector<8x256xf32>
    %cst_51 = arith.constant 0.000000e+00 : f32
    %98 = vector.shape_cast %18 : vector<1x256xi1> to vector<1x256xi1>
    %99 = vector.broadcast %98 : vector<1x256xi1> to vector<8x256xi1>
    %100 = vector.broadcast %cst_51 : f32 to vector<8x256xf32>
    %101 = arith.select %99, %97, %100 : vector<8x256xi1>, vector<8x256xf32>
    %c6 = arith.constant 6 : index
    %c0_52 = arith.constant 0 : index
    %c0_53 = arith.constant 0 : index
    %102 = vector.load %arg2[%c6, %c0_52, %c0_53] : memref<9x8x8xf32, #tpu.memory_space<vmem>>, vector<1x8x8xf32>
    %103 = vector.shape_cast %102 : vector<1x8x8xf32> to vector<8x8xf32>
    %cst_54 = arith.constant dense<0.000000e+00> : vector<8x256xf32>
    %104 = tpu.matmul %103, %101, %cst_54 {dimension_numbers = #tpu.dot_dimension_numbers<[1], [0], [0], [1], [0, 0, 1, 1], [], []>} : vector<8x8xf32>, vector<8x256xf32>, vector<8x256xf32> -> vector<8x256xf32>
    %105 = arith.addf %96, %104 : vector<8x256xf32>
    %c0_55 = arith.constant 0 : index
    %c144 = arith.constant 144 : index
    %106 = vector.load %arg13[%c0_55, %c144] : memref<24x512xf32, #tpu.memory_space<vmem>>, vector<8x256xf32>
    %c7 = arith.constant 7 : index
    %c0_56 = arith.constant 0 : index
    %c0_57 = arith.constant 0 : index
    %107 = vector.load %arg2[%c7, %c0_56, %c0_57] : memref<9x8x8xf32, #tpu.memory_space<vmem>>, vector<1x8x8xf32>
    %108 = vector.shape_cast %107 : vector<1x8x8xf32> to vector<8x8xf32>
    %cst_58 = arith.constant dense<0.000000e+00> : vector<8x256xf32>
    %109 = tpu.matmul %108, %106, %cst_58 {dimension_numbers = #tpu.dot_dimension_numbers<[1], [0], [0], [1], [0, 0, 1, 1], [], []>} : vector<8x8xf32>, vector<8x256xf32>, vector<8x256xf32> -> vector<8x256xf32>
    %110 = arith.addf %105, %109 : vector<8x256xf32>
    %c0_59 = arith.constant 0 : index
    %c145 = arith.constant 145 : index
    %111 = vector.load %arg13[%c0_59, %c145] : memref<24x512xf32, #tpu.memory_space<vmem>>, vector<8x256xf32>
    %cst_60 = arith.constant 0.000000e+00 : f32
    %112 = vector.shape_cast %20 : vector<1x256xi1> to vector<1x256xi1>
    %113 = vector.broadcast %112 : vector<1x256xi1> to vector<8x256xi1>
    %114 = vector.broadcast %cst_60 : f32 to vector<8x256xf32>
    %115 = arith.select %113, %111, %114 : vector<8x256xi1>, vector<8x256xf32>
    %c8 = arith.constant 8 : index
    %c0_61 = arith.constant 0 : index
    %c0_62 = arith.constant 0 : index
    %116 = vector.load %arg2[%c8, %c0_61, %c0_62] : memref<9x8x8xf32, #tpu.memory_space<vmem>>, vector<1x8x8xf32>
    %117 = vector.shape_cast %116 : vector<1x8x8xf32> to vector<8x8xf32>
    %cst_63 = arith.constant dense<0.000000e+00> : vector<8x256xf32>
    %118 = tpu.matmul %117, %115, %cst_63 {dimension_numbers = #tpu.dot_dimension_numbers<[1], [0], [0], [1], [0, 0, 1, 1], [], []>} : vector<8x8xf32>, vector<8x256xf32>, vector<8x256xf32> -> vector<8x256xf32>
    %119 = arith.addf %110, %118 : vector<8x256xf32>
    %c0_64 = arith.constant 0 : index
    %c0_65 = arith.constant 0 : index
    %120 = vector.load %arg3[%c0_64, %c0_65] : memref<8x1xf32, #tpu.memory_space<vmem>>, vector<8x1xf32>
    %121 = vector.broadcast %120 : vector<8x1xf32> to vector<8x256xf32>
    %122 = arith.addf %119, %121 : vector<8x256xf32>
    %cst_66 = arith.constant 0.000000e+00 : f32
    %123 = vector.broadcast %cst_66 : f32 to vector<8x256xf32>
    %124 = arith.maximumf %122, %123 : vector<8x256xf32>
    %c16 = arith.constant 16 : index
    %c128_67 = arith.constant 128 : index
    %125 = vector.load %arg13[%c16, %c128_67] : memref<24x512xf32, #tpu.memory_space<vmem>>, vector<8x256xf32>
    tpu.vector_store %arg13[%c16, %c128_67], %124 {strides = array<i32>} : memref<24x512xf32, #tpu.memory_space<vmem>>, vector<8x256xf32>,
    %c16_68 = arith.constant 16 : index
    %c384_69 = arith.constant 384 : index
    %126 = vector.load %arg13[%c16_68, %c384_69] : memref<24x512xf32, #tpu.memory_space<vmem>>, vector<8x17xf32>
    tpu.vector_store %arg13[%c16_68, %c384_69], %43 {strides = array<i32>} : memref<24x512xf32, #tpu.memory_space<vmem>>, vector<8x17xf32>,
    %c16_70 = arith.constant 16 : index
    %c128_71 = arith.constant 128 : index
    %127 = vector.load %arg13[%c16_70, %c128_71] : memref<24x512xf32, #tpu.memory_space<vmem>>, vector<8x256xf32>
    %c16_72 = arith.constant 16 : index
    %c129_73 = arith.constant 129 : index
    %128 = vector.load %arg13[%c16_72, %c129_73] : memref<24x512xf32, #tpu.memory_space<vmem>>, vector<8x256xf32>
    %c16_74 = arith.constant 16 : index
    %c144_75 = arith.constant 144 : index
    %129 = vector.load %arg13[%c16_74, %c144_75] : memref<24x512xf32, #tpu.memory_space<vmem>>, vector<8x256xf32>
    %c16_76 = arith.constant 16 : index
    %c145_77 = arith.constant 145 : index
    %130 = vector.load %arg13[%c16_76, %c145_77] : memref<24x512xf32, #tpu.memory_space<vmem>>, vector<8x256xf32>
    %131 = arith.maximumf %127, %128 : vector<8x256xf32>
    %132 = arith.maximumf %129, %130 : vector<8x256xf32>
    %133 = arith.maximumf %131, %132 : vector<8x256xf32>
    %c0_78 = arith.constant 0 : index
    %c0_79 = arith.constant 0 : index
    %134 = vector.load %arg10[%c0_78, %c0_79] : memref<256x64xf32, #tpu.memory_space<vmem>>, vector<256x64xf32>
    %cst_80 = arith.constant dense<0.000000e+00> : vector<8x64xf32>
    %135 = tpu.matmul %133, %134, %cst_80 {dimension_numbers = #tpu.dot_dimension_numbers<[1], [0], [0], [1], [0, 0, 1, 1], [], []>} : vector<8x256xf32>, vector<256x64xf32>, vector<8x64xf32> -> vector<8x64xf32>
    %c0_81 = arith.constant 0 : index
    %c119 = arith.constant 119 : index
    %136 = vector.load %arg13[%c0_81, %c119] : memref<24x512xf32, #tpu.memory_space<vmem>>, vector<8x9xf32>
    tpu.vector_store %arg13[%c0_81, %c119], %44 {strides = array<i32>} : memref<24x512xf32, #tpu.memory_space<vmem>>, vector<8x9xf32>,
    %c0_82 = arith.constant 0 : index
    %c192 = arith.constant 192 : index
    %137 = vector.load %arg13[%c0_82, %c192] : memref<24x512xf32, #tpu.memory_space<vmem>>, vector<8x9xf32>
    tpu.vector_store %arg13[%c0_82, %c192], %44 {strides = array<i32>} : memref<24x512xf32, #tpu.memory_space<vmem>>, vector<8x9xf32>,
    %c0_83 = arith.constant 0 : index
    %c128_84 = arith.constant 128 : index
    %138 = vector.load %arg13[%c0_83, %c128_84] : memref<24x512xf32, #tpu.memory_space<vmem>>, vector<8x64xf32>
    tpu.vector_store %arg13[%c0_83, %c128_84], %135 {strides = array<i32>} : memref<24x512xf32, #tpu.memory_space<vmem>>, vector<8x64xf32>,
    %c0_85 = arith.constant 0 : index
    %c119_86 = arith.constant 119 : index
    %139 = vector.load %arg13[%c0_85, %c119_86] : memref<24x512xf32, #tpu.memory_space<vmem>>, vector<8x64xf32>
    %cst_87 = arith.constant 0.000000e+00 : f32
    %140 = vector.shape_cast %39 : vector<1x64xi1> to vector<1x64xi1>
    %141 = vector.broadcast %140 : vector<1x64xi1> to vector<8x64xi1>
    %142 = vector.broadcast %cst_87 : f32 to vector<8x64xf32>
    %143 = arith.select %141, %139, %142 : vector<8x64xi1>, vector<8x64xf32>
    %c0_88 = arith.constant 0 : index
    %c0_89 = arith.constant 0 : index
    %c0_90 = arith.constant 0 : index
    %144 = vector.load %arg4[%c0_88, %c0_89, %c0_90] : memref<9x16x8xf32, #tpu.memory_space<vmem>>, vector<1x16x8xf32>
    %145 = vector.shape_cast %144 : vector<1x16x8xf32> to vector<16x8xf32>
    %cst_91 = arith.constant dense<0.000000e+00> : vector<16x64xf32>
    %146 = tpu.matmul %145, %143, %cst_91 {dimension_numbers = #tpu.dot_dimension_numbers<[1], [0], [0], [1], [0, 0, 1, 1], [], []>} : vector<16x8xf32>, vector<8x64xf32>, vector<16x64xf32> -> vector<16x64xf32>
    %c0_92 = arith.constant 0 : index
    %c120 = arith.constant 120 : index
    %147 = vector.load %arg13[%c0_92, %c120] : memref<24x512xf32, #tpu.memory_space<vmem>>, vector<8x64xf32>
    %c1_93 = arith.constant 1 : index
    %c0_94 = arith.constant 0 : index
    %c0_95 = arith.constant 0 : index
    %148 = vector.load %arg4[%c1_93, %c0_94, %c0_95] : memref<9x16x8xf32, #tpu.memory_space<vmem>>, vector<1x16x8xf32>
    %149 = vector.shape_cast %148 : vector<1x16x8xf32> to vector<16x8xf32>
    %cst_96 = arith.constant dense<0.000000e+00> : vector<16x64xf32>
    %150 = tpu.matmul %149, %147, %cst_96 {dimension_numbers = #tpu.dot_dimension_numbers<[1], [0], [0], [1], [0, 0, 1, 1], [], []>} : vector<16x8xf32>, vector<8x64xf32>, vector<16x64xf32> -> vector<16x64xf32>
    %151 = arith.addf %146, %150 : vector<16x64xf32>
    %c0_97 = arith.constant 0 : index
    %c121 = arith.constant 121 : index
    %152 = vector.load %arg13[%c0_97, %c121] : memref<24x512xf32, #tpu.memory_space<vmem>>, vector<8x64xf32>
    %cst_98 = arith.constant 0.000000e+00 : f32
    %153 = vector.shape_cast %41 : vector<1x64xi1> to vector<1x64xi1>
    %154 = vector.broadcast %153 : vector<1x64xi1> to vector<8x64xi1>
    %155 = vector.broadcast %cst_98 : f32 to vector<8x64xf32>
    %156 = arith.select %154, %152, %155 : vector<8x64xi1>, vector<8x64xf32>
    %c2_99 = arith.constant 2 : index
    %c0_100 = arith.constant 0 : index
    %c0_101 = arith.constant 0 : index
    %157 = vector.load %arg4[%c2_99, %c0_100, %c0_101] : memref<9x16x8xf32, #tpu.memory_space<vmem>>, vector<1x16x8xf32>
    %158 = vector.shape_cast %157 : vector<1x16x8xf32> to vector<16x8xf32>
    %cst_102 = arith.constant dense<0.000000e+00> : vector<16x64xf32>
    %159 = tpu.matmul %158, %156, %cst_102 {dimension_numbers = #tpu.dot_dimension_numbers<[1], [0], [0], [1], [0, 0, 1, 1], [], []>} : vector<16x8xf32>, vector<8x64xf32>, vector<16x64xf32> -> vector<16x64xf32>
    %160 = arith.addf %151, %159 : vector<16x64xf32>
    %c0_103 = arith.constant 0 : index
    %c127_104 = arith.constant 127 : index
    %161 = vector.load %arg13[%c0_103, %c127_104] : memref<24x512xf32, #tpu.memory_space<vmem>>, vector<8x64xf32>
    %cst_105 = arith.constant 0.000000e+00 : f32
    %162 = vector.shape_cast %39 : vector<1x64xi1> to vector<1x64xi1>
    %163 = vector.broadcast %162 : vector<1x64xi1> to vector<8x64xi1>
    %164 = vector.broadcast %cst_105 : f32 to vector<8x64xf32>
    %165 = arith.select %163, %161, %164 : vector<8x64xi1>, vector<8x64xf32>
    %c3_106 = arith.constant 3 : index
    %c0_107 = arith.constant 0 : index
    %c0_108 = arith.constant 0 : index
    %166 = vector.load %arg4[%c3_106, %c0_107, %c0_108] : memref<9x16x8xf32, #tpu.memory_space<vmem>>, vector<1x16x8xf32>
    %167 = vector.shape_cast %166 : vector<1x16x8xf32> to vector<16x8xf32>
    %cst_109 = arith.constant dense<0.000000e+00> : vector<16x64xf32>
    %168 = tpu.matmul %167, %165, %cst_109 {dimension_numbers = #tpu.dot_dimension_numbers<[1], [0], [0], [1], [0, 0, 1, 1], [], []>} : vector<16x8xf32>, vector<8x64xf32>, vector<16x64xf32> -> vector<16x64xf32>
    %169 = arith.addf %160, %168 : vector<16x64xf32>
    %c0_110 = arith.constant 0 : index
    %c128_111 = arith.constant 128 : index
    %170 = vector.load %arg13[%c0_110, %c128_111] : memref<24x512xf32, #tpu.memory_space<vmem>>, vector<8x64xf32>
    %c4_112 = arith.constant 4 : index
    %c0_113 = arith.constant 0 : index
    %c0_114 = arith.constant 0 : index
    %171 = vector.load %arg4[%c4_112, %c0_113, %c0_114] : memref<9x16x8xf32, #tpu.memory_space<vmem>>, vector<1x16x8xf32>
    %172 = vector.shape_cast %171 : vector<1x16x8xf32> to vector<16x8xf32>
    %cst_115 = arith.constant dense<0.000000e+00> : vector<16x64xf32>
    %173 = tpu.matmul %172, %170, %cst_115 {dimension_numbers = #tpu.dot_dimension_numbers<[1], [0], [0], [1], [0, 0, 1, 1], [], []>} : vector<16x8xf32>, vector<8x64xf32>, vector<16x64xf32> -> vector<16x64xf32>
    %174 = arith.addf %169, %173 : vector<16x64xf32>
    %c0_116 = arith.constant 0 : index
    %c129_117 = arith.constant 129 : index
    %175 = vector.load %arg13[%c0_116, %c129_117] : memref<24x512xf32, #tpu.memory_space<vmem>>, vector<8x64xf32>
    %cst_118 = arith.constant 0.000000e+00 : f32
    %176 = vector.shape_cast %41 : vector<1x64xi1> to vector<1x64xi1>
    %177 = vector.broadcast %176 : vector<1x64xi1> to vector<8x64xi1>
    %178 = vector.broadcast %cst_118 : f32 to vector<8x64xf32>
    %179 = arith.select %177, %175, %178 : vector<8x64xi1>, vector<8x64xf32>
    %c5_119 = arith.constant 5 : index
    %c0_120 = arith.constant 0 : index
    %c0_121 = arith.constant 0 : index
    %180 = vector.load %arg4[%c5_119, %c0_120, %c0_121] : memref<9x16x8xf32, #tpu.memory_space<vmem>>, vector<1x16x8xf32>
    %181 = vector.shape_cast %180 : vector<1x16x8xf32> to vector<16x8xf32>
    %cst_122 = arith.constant dense<0.000000e+00> : vector<16x64xf32>
    %182 = tpu.matmul %181, %179, %cst_122 {dimension_numbers = #tpu.dot_dimension_numbers<[1], [0], [0], [1], [0, 0, 1, 1], [], []>} : vector<16x8xf32>, vector<8x64xf32>, vector<16x64xf32> -> vector<16x64xf32>
    %183 = arith.addf %174, %182 : vector<16x64xf32>
    %c0_123 = arith.constant 0 : index
    %c135 = arith.constant 135 : index
    %184 = vector.load %arg13[%c0_123, %c135] : memref<24x512xf32, #tpu.memory_space<vmem>>, vector<8x64xf32>
    %cst_124 = arith.constant 0.000000e+00 : f32
    %185 = vector.shape_cast %39 : vector<1x64xi1> to vector<1x64xi1>
    %186 = vector.broadcast %185 : vector<1x64xi1> to vector<8x64xi1>
    %187 = vector.broadcast %cst_124 : f32 to vector<8x64xf32>
    %188 = arith.select %186, %184, %187 : vector<8x64xi1>, vector<8x64xf32>
    %c6_125 = arith.constant 6 : index
    %c0_126 = arith.constant 0 : index
    %c0_127 = arith.constant 0 : index
    %189 = vector.load %arg4[%c6_125, %c0_126, %c0_127] : memref<9x16x8xf32, #tpu.memory_space<vmem>>, vector<1x16x8xf32>
    %190 = vector.shape_cast %189 : vector<1x16x8xf32> to vector<16x8xf32>
    %cst_128 = arith.constant dense<0.000000e+00> : vector<16x64xf32>
    %191 = tpu.matmul %190, %188, %cst_128 {dimension_numbers = #tpu.dot_dimension_numbers<[1], [0], [0], [1], [0, 0, 1, 1], [], []>} : vector<16x8xf32>, vector<8x64xf32>, vector<16x64xf32> -> vector<16x64xf32>
    %192 = arith.addf %183, %191 : vector<16x64xf32>
    %c0_129 = arith.constant 0 : index
    %c136 = arith.constant 136 : index
    %193 = vector.load %arg13[%c0_129, %c136] : memref<24x512xf32, #tpu.memory_space<vmem>>, vector<8x64xf32>
    %c7_130 = arith.constant 7 : index
    %c0_131 = arith.constant 0 : index
    %c0_132 = arith.constant 0 : index
    %194 = vector.load %arg4[%c7_130, %c0_131, %c0_132] : memref<9x16x8xf32, #tpu.memory_space<vmem>>, vector<1x16x8xf32>
    %195 = vector.shape_cast %194 : vector<1x16x8xf32> to vector<16x8xf32>
    %cst_133 = arith.constant dense<0.000000e+00> : vector<16x64xf32>
    %196 = tpu.matmul %195, %193, %cst_133 {dimension_numbers = #tpu.dot_dimension_numbers<[1], [0], [0], [1], [0, 0, 1, 1], [], []>} : vector<16x8xf32>, vector<8x64xf32>, vector<16x64xf32> -> vector<16x64xf32>
    %197 = arith.addf %192, %196 : vector<16x64xf32>
    %c0_134 = arith.constant 0 : index
    %c137 = arith.constant 137 : index
    %198 = vector.load %arg13[%c0_134, %c137] : memref<24x512xf32, #tpu.memory_space<vmem>>, vector<8x64xf32>
    %cst_135 = arith.constant 0.000000e+00 : f32
    %199 = vector.shape_cast %41 : vector<1x64xi1> to vector<1x64xi1>
    %200 = vector.broadcast %199 : vector<1x64xi1> to vector<8x64xi1>
    %201 = vector.broadcast %cst_135 : f32 to vector<8x64xf32>
    %202 = arith.select %200, %198, %201 : vector<8x64xi1>, vector<8x64xf32>
    %c8_136 = arith.constant 8 : index
    %c0_137 = arith.constant 0 : index
    %c0_138 = arith.constant 0 : index
    %203 = vector.load %arg4[%c8_136, %c0_137, %c0_138] : memref<9x16x8xf32, #tpu.memory_space<vmem>>, vector<1x16x8xf32>
    %204 = vector.shape_cast %203 : vector<1x16x8xf32> to vector<16x8xf32>
    %cst_139 = arith.constant dense<0.000000e+00> : vector<16x64xf32>
    %205 = tpu.matmul %204, %202, %cst_139 {dimension_numbers = #tpu.dot_dimension_numbers<[1], [0], [0], [1], [0, 0, 1, 1], [], []>} : vector<16x8xf32>, vector<8x64xf32>, vector<16x64xf32> -> vector<16x64xf32>
    %206 = arith.addf %197, %205 : vector<16x64xf32>
    %c0_140 = arith.constant 0 : index
    %c0_141 = arith.constant 0 : index
    %207 = vector.load %arg5[%c0_140, %c0_141] : memref<16x1xf32, #tpu.memory_space<vmem>>, vector<16x1xf32>
    %208 = vector.broadcast %207 : vector<16x1xf32> to vector<16x64xf32>
    %209 = arith.addf %206, %208 : vector<16x64xf32>
    %cst_142 = arith.constant 0.000000e+00 : f32
    %210 = vector.broadcast %cst_142 : f32 to vector<16x64xf32>
    %211 = arith.maximumf %209, %210 : vector<16x64xf32>
    %c0_143 = arith.constant 0 : index
    %c0_144 = arith.constant 0 : index
    %212 = vector.load %arg11[%c0_143, %c0_144] : memref<64x256xf32, #tpu.memory_space<vmem>>, vector<64x256xf32>
    %cst_145 = arith.constant dense<0.000000e+00> : vector<16x256xf32>
    %213 = tpu.matmul %211, %212, %cst_145 {dimension_numbers = #tpu.dot_dimension_numbers<[1], [0], [0], [1], [0, 0, 1, 1], [], []>} : vector<16x64xf32>, vector<64x256xf32>, vector<16x256xf32> -> vector<16x256xf32>
    %c0_146 = arith.constant 0 : index
    %c128_147 = arith.constant 128 : index
    %214 = vector.load %arg13[%c0_146, %c128_147] : memref<24x512xf32, #tpu.memory_space<vmem>>, vector<16x256xf32>
    tpu.vector_store %arg13[%c0_146, %c128_147], %213 {strides = array<i32>} : memref<24x512xf32, #tpu.memory_space<vmem>>, vector<16x256xf32>,
    %c0_148 = arith.constant 0 : index
    %c111_149 = arith.constant 111 : index
    %215 = vector.load %arg13[%c0_148, %c111_149] : memref<24x512xf32, #tpu.memory_space<vmem>>, vector<24x17xf32>
    tpu.vector_store %arg13[%c0_148, %c111_149], %46 {strides = array<i32>} : memref<24x512xf32, #tpu.memory_space<vmem>>, vector<24x17xf32>,
    %c0_150 = arith.constant 0 : index
    %c384_151 = arith.constant 384 : index
    %216 = vector.load %arg13[%c0_150, %c384_151] : memref<24x512xf32, #tpu.memory_space<vmem>>, vector<16x17xf32>
    tpu.vector_store %arg13[%c0_150, %c384_151], %45 {strides = array<i32>} : memref<24x512xf32, #tpu.memory_space<vmem>>, vector<16x17xf32>,
    %c0_152 = arith.constant 0 : index
    %c111_153 = arith.constant 111 : index
    %217 = vector.load %arg13[%c0_152, %c111_153] : memref<24x512xf32, #tpu.memory_space<vmem>>, vector<24x256xf32>
    %cst_154 = arith.constant 0.000000e+00 : f32
    %218 = vector.shape_cast %18 : vector<1x256xi1> to vector<1x256xi1>
    %219 = vector.broadcast %218 : vector<1x256xi1> to vector<24x256xi1>
    %220 = vector.broadcast %cst_154 : f32 to vector<24x256xf32>
    %221 = arith.select %219, %217, %220 : vector<24x256xi1>, vector<24x256xf32>
    %c0_155 = arith.constant 0 : index
    %c0_156 = arith.constant 0 : index
    %c0_157 = arith.constant 0 : index
    %222 = vector.load %arg6[%c0_155, %c0_156, %c0_157] : memref<9x8x24xf32, #tpu.memory_space<vmem>>, vector<1x8x24xf32>
    %223 = vector.shape_cast %222 : vector<1x8x24xf32> to vector<8x24xf32>
    %cst_158 = arith.constant dense<0.000000e+00> : vector<8x256xf32>
    %224 = tpu.matmul %223, %221, %cst_158 {dimension_numbers = #tpu.dot_dimension_numbers<[1], [0], [0], [1], [0, 0, 1, 1], [], []>} : vector<8x24xf32>, vector<24x256xf32>, vector<8x256xf32> -> vector<8x256xf32>
    %c0_159 = arith.constant 0 : index
    %c112_160 = arith.constant 112 : index
    %225 = vector.load %arg13[%c0_159, %c112_160] : memref<24x512xf32, #tpu.memory_space<vmem>>, vector<24x256xf32>
    %c1_161 = arith.constant 1 : index
    %c0_162 = arith.constant 0 : index
    %c0_163 = arith.constant 0 : index
    %226 = vector.load %arg6[%c1_161, %c0_162, %c0_163] : memref<9x8x24xf32, #tpu.memory_space<vmem>>, vector<1x8x24xf32>
    %227 = vector.shape_cast %226 : vector<1x8x24xf32> to vector<8x24xf32>
    %cst_164 = arith.constant dense<0.000000e+00> : vector<8x256xf32>
    %228 = tpu.matmul %227, %225, %cst_164 {dimension_numbers = #tpu.dot_dimension_numbers<[1], [0], [0], [1], [0, 0, 1, 1], [], []>} : vector<8x24xf32>, vector<24x256xf32>, vector<8x256xf32> -> vector<8x256xf32>
    %229 = arith.addf %224, %228 : vector<8x256xf32>
    %c0_165 = arith.constant 0 : index
    %c113_166 = arith.constant 113 : index
    %230 = vector.load %arg13[%c0_165, %c113_166] : memref<24x512xf32, #tpu.memory_space<vmem>>, vector<24x256xf32>
    %cst_167 = arith.constant 0.000000e+00 : f32
    %231 = vector.shape_cast %20 : vector<1x256xi1> to vector<1x256xi1>
    %232 = vector.broadcast %231 : vector<1x256xi1> to vector<24x256xi1>
    %233 = vector.broadcast %cst_167 : f32 to vector<24x256xf32>
    %234 = arith.select %232, %230, %233 : vector<24x256xi1>, vector<24x256xf32>
    %c2_168 = arith.constant 2 : index
    %c0_169 = arith.constant 0 : index
    %c0_170 = arith.constant 0 : index
    %235 = vector.load %arg6[%c2_168, %c0_169, %c0_170] : memref<9x8x24xf32, #tpu.memory_space<vmem>>, vector<1x8x24xf32>
    %236 = vector.shape_cast %235 : vector<1x8x24xf32> to vector<8x24xf32>
    %cst_171 = arith.constant dense<0.000000e+00> : vector<8x256xf32>
    %237 = tpu.matmul %236, %234, %cst_171 {dimension_numbers = #tpu.dot_dimension_numbers<[1], [0], [0], [1], [0, 0, 1, 1], [], []>} : vector<8x24xf32>, vector<24x256xf32>, vector<8x256xf32> -> vector<8x256xf32>
    %238 = arith.addf %229, %237 : vector<8x256xf32>
    %c0_172 = arith.constant 0 : index
    %c127_173 = arith.constant 127 : index
    %239 = vector.load %arg13[%c0_172, %c127_173] : memref<24x512xf32, #tpu.memory_space<vmem>>, vector<24x256xf32>
    %cst_174 = arith.constant 0.000000e+00 : f32
    %240 = vector.shape_cast %18 : vector<1x256xi1> to vector<1x256xi1>
    %241 = vector.broadcast %240 : vector<1x256xi1> to vector<24x256xi1>
    %242 = vector.broadcast %cst_174 : f32 to vector<24x256xf32>
    %243 = arith.select %241, %239, %242 : vector<24x256xi1>, vector<24x256xf32>
    %c3_175 = arith.constant 3 : index
    %c0_176 = arith.constant 0 : index
    %c0_177 = arith.constant 0 : index
    %244 = vector.load %arg6[%c3_175, %c0_176, %c0_177] : memref<9x8x24xf32, #tpu.memory_space<vmem>>, vector<1x8x24xf32>
    %245 = vector.shape_cast %244 : vector<1x8x24xf32> to vector<8x24xf32>
    %cst_178 = arith.constant dense<0.000000e+00> : vector<8x256xf32>
    %246 = tpu.matmul %245, %243, %cst_178 {dimension_numbers = #tpu.dot_dimension_numbers<[1], [0], [0], [1], [0, 0, 1, 1], [], []>} : vector<8x24xf32>, vector<24x256xf32>, vector<8x256xf32> -> vector<8x256xf32>
    %247 = arith.addf %238, %246 : vector<8x256xf32>
    %c0_179 = arith.constant 0 : index
    %c128_180 = arith.constant 128 : index
    %248 = vector.load %arg13[%c0_179, %c128_180] : memref<24x512xf32, #tpu.memory_space<vmem>>, vector<24x256xf32>
    %c4_181 = arith.constant 4 : index
    %c0_182 = arith.constant 0 : index
    %c0_183 = arith.constant 0 : index
    %249 = vector.load %arg6[%c4_181, %c0_182, %c0_183] : memref<9x8x24xf32, #tpu.memory_space<vmem>>, vector<1x8x24xf32>
    %250 = vector.shape_cast %249 : vector<1x8x24xf32> to vector<8x24xf32>
    %cst_184 = arith.constant dense<0.000000e+00> : vector<8x256xf32>
    %251 = tpu.matmul %250, %248, %cst_184 {dimension_numbers = #tpu.dot_dimension_numbers<[1], [0], [0], [1], [0, 0, 1, 1], [], []>} : vector<8x24xf32>, vector<24x256xf32>, vector<8x256xf32> -> vector<8x256xf32>
    %252 = arith.addf %247, %251 : vector<8x256xf32>
    %c0_185 = arith.constant 0 : index
    %c129_186 = arith.constant 129 : index
    %253 = vector.load %arg13[%c0_185, %c129_186] : memref<24x512xf32, #tpu.memory_space<vmem>>, vector<24x256xf32>
    %cst_187 = arith.constant 0.000000e+00 : f32
    %254 = vector.shape_cast %20 : vector<1x256xi1> to vector<1x256xi1>
    %255 = vector.broadcast %254 : vector<1x256xi1> to vector<24x256xi1>
    %256 = vector.broadcast %cst_187 : f32 to vector<24x256xf32>
    %257 = arith.select %255, %253, %256 : vector<24x256xi1>, vector<24x256xf32>
    %c5_188 = arith.constant 5 : index
    %c0_189 = arith.constant 0 : index
    %c0_190 = arith.constant 0 : index
    %258 = vector.load %arg6[%c5_188, %c0_189, %c0_190] : memref<9x8x24xf32, #tpu.memory_space<vmem>>, vector<1x8x24xf32>
    %259 = vector.shape_cast %258 : vector<1x8x24xf32> to vector<8x24xf32>
    %cst_191 = arith.constant dense<0.000000e+00> : vector<8x256xf32>
    %260 = tpu.matmul %259, %257, %cst_191 {dimension_numbers = #tpu.dot_dimension_numbers<[1], [0], [0], [1], [0, 0, 1, 1], [], []>} : vector<8x24xf32>, vector<24x256xf32>, vector<8x256xf32> -> vector<8x256xf32>
    %261 = arith.addf %252, %260 : vector<8x256xf32>
    %c0_192 = arith.constant 0 : index
    %c143_193 = arith.constant 143 : index
    %262 = vector.load %arg13[%c0_192, %c143_193] : memref<24x512xf32, #tpu.memory_space<vmem>>, vector<24x256xf32>
    %cst_194 = arith.constant 0.000000e+00 : f32
    %263 = vector.shape_cast %18 : vector<1x256xi1> to vector<1x256xi1>
    %264 = vector.broadcast %263 : vector<1x256xi1> to vector<24x256xi1>
    %265 = vector.broadcast %cst_194 : f32 to vector<24x256xf32>
    %266 = arith.select %264, %262, %265 : vector<24x256xi1>, vector<24x256xf32>
    %c6_195 = arith.constant 6 : index
    %c0_196 = arith.constant 0 : index
    %c0_197 = arith.constant 0 : index
    %267 = vector.load %arg6[%c6_195, %c0_196, %c0_197] : memref<9x8x24xf32, #tpu.memory_space<vmem>>, vector<1x8x24xf32>
    %268 = vector.shape_cast %267 : vector<1x8x24xf32> to vector<8x24xf32>
    %cst_198 = arith.constant dense<0.000000e+00> : vector<8x256xf32>
    %269 = tpu.matmul %268, %266, %cst_198 {dimension_numbers = #tpu.dot_dimension_numbers<[1], [0], [0], [1], [0, 0, 1, 1], [], []>} : vector<8x24xf32>, vector<24x256xf32>, vector<8x256xf32> -> vector<8x256xf32>
    %270 = arith.addf %261, %269 : vector<8x256xf32>
    %c0_199 = arith.constant 0 : index
    %c144_200 = arith.constant 144 : index
    %271 = vector.load %arg13[%c0_199, %c144_200] : memref<24x512xf32, #tpu.memory_space<vmem>>, vector<24x256xf32>
    %c7_201 = arith.constant 7 : index
    %c0_202 = arith.constant 0 : index
    %c0_203 = arith.constant 0 : index
    %272 = vector.load %arg6[%c7_201, %c0_202, %c0_203] : memref<9x8x24xf32, #tpu.memory_space<vmem>>, vector<1x8x24xf32>
    %273 = vector.shape_cast %272 : vector<1x8x24xf32> to vector<8x24xf32>
    %cst_204 = arith.constant dense<0.000000e+00> : vector<8x256xf32>
    %274 = tpu.matmul %273, %271, %cst_204 {dimension_numbers = #tpu.dot_dimension_numbers<[1], [0], [0], [1], [0, 0, 1, 1], [], []>} : vector<8x24xf32>, vector<24x256xf32>, vector<8x256xf32> -> vector<8x256xf32>
    %275 = arith.addf %270, %274 : vector<8x256xf32>
    %c0_205 = arith.constant 0 : index
    %c145_206 = arith.constant 145 : index
    %276 = vector.load %arg13[%c0_205, %c145_206] : memref<24x512xf32, #tpu.memory_space<vmem>>, vector<24x256xf32>
    %cst_207 = arith.constant 0.000000e+00 : f32
    %277 = vector.shape_cast %20 : vector<1x256xi1> to vector<1x256xi1>
    %278 = vector.broadcast %277 : vector<1x256xi1> to vector<24x256xi1>
    %279 = vector.broadcast %cst_207 : f32 to vector<24x256xf32>
    %280 = arith.select %278, %276, %279 : vector<24x256xi1>, vector<24x256xf32>
    %c8_208 = arith.constant 8 : index
    %c0_209 = arith.constant 0 : index
    %c0_210 = arith.constant 0 : index
    %281 = vector.load %arg6[%c8_208, %c0_209, %c0_210] : memref<9x8x24xf32, #tpu.memory_space<vmem>>, vector<1x8x24xf32>
    %282 = vector.shape_cast %281 : vector<1x8x24xf32> to vector<8x24xf32>
    %cst_211 = arith.constant dense<0.000000e+00> : vector<8x256xf32>
    %283 = tpu.matmul %282, %280, %cst_211 {dimension_numbers = #tpu.dot_dimension_numbers<[1], [0], [0], [1], [0, 0, 1, 1], [], []>} : vector<8x24xf32>, vector<24x256xf32>, vector<8x256xf32> -> vector<8x256xf32>
    %284 = arith.addf %275, %283 : vector<8x256xf32>
    %c0_212 = arith.constant 0 : index
    %c0_213 = arith.constant 0 : index
    %285 = vector.load %arg7[%c0_212, %c0_213] : memref<8x1xf32, #tpu.memory_space<vmem>>, vector<8x1xf32>
    %286 = vector.broadcast %285 : vector<8x1xf32> to vector<8x256xf32>
    %287 = arith.addf %284, %286 : vector<8x256xf32>
    %cst_214 = arith.constant 0.000000e+00 : f32
    %288 = vector.broadcast %cst_214 : f32 to vector<8x256xf32>
    %289 = arith.maximumf %287, %288 : vector<8x256xf32>
    %c0_215 = arith.constant 0 : index
    %c0_216 = arith.constant 0 : index
    %290 = vector.load %arg8[%c0_215, %c0_216] : memref<1x8xf32, #tpu.memory_space<vmem>>, vector<1x8xf32>
    %cst_217 = arith.constant dense<0.000000e+00> : vector<1x256xf32>
    %291 = tpu.matmul %290, %289, %cst_217 {dimension_numbers = #tpu.dot_dimension_numbers<[1], [0], [0], [1], [0, 0, 1, 1], [], []>} : vector<1x8xf32>, vector<8x256xf32>, vector<1x256xf32> -> vector<1x256xf32>
    %c0_218 = arith.constant 0 : index
    %c0_219 = arith.constant 0 : index
    %292 = vector.load %arg9[%c0_218, %c0_219] : memref<1x1xf32, #tpu.memory_space<vmem>>, vector<1x1xf32>
    %293 = vector.broadcast %292 : vector<1x1xf32> to vector<1x256xf32>
    %294 = arith.addf %291, %293 : vector<1x256xf32>
    %c0_220 = arith.constant 0 : index
    %c0_221 = arith.constant 0 : index
    %c0_222 = arith.constant 0 : index
    %295 = vector.load %arg12[%c0_220, %c0_221, %c0_222] : memref<1x1x256xf32, #tpu.memory_space<vmem>>, vector<1x1x256xf32>
    %296 = vector.shape_cast %295 : vector<1x1x256xf32> to vector<1x256xf32>
    %297 = vector.shape_cast %294 : vector<1x256xf32> to vector<1x1x256xf32>
    tpu.vector_store %arg12[%c0_220, %c0_221, %c0_222], %297 {strides = array<i32>} : memref<1x1x256xf32, #tpu.memory_space<vmem>>, vector<1x1x256xf32>,
    return
  }
  func.func @transform_0(%arg0: i32) -> (i32, i32, i32) {
    %c0_i32 = arith.constant 0 : i32
    %c0_i32_0 = arith.constant 0 : i32
    %c0_i32_1 = arith.constant 0 : i32
    return %arg0, %c0_i32, %c0_i32_0 : i32, i32, i32
  }
  func.func @transform_1(%arg0: i32) -> (i32, i32, i32) {
    %c0_i32 = arith.constant 0 : i32
    %c0_i32_0 = arith.constant 0 : i32
    %c0_i32_1 = arith.constant 0 : i32
    %c0_i32_2 = arith.constant 0 : i32
    return %c0_i32, %c0_i32_0, %c0_i32_1 : i32, i32, i32
  }
  func.func @transform_2(%arg0: i32) -> (i32, i32) {
    %c0_i32 = arith.constant 0 : i32
    %c0_i32_0 = arith.constant 0 : i32
    %c0_i32_1 = arith.constant 0 : i32
    return %c0_i32, %c0_i32_0 : i32, i32
  }
  func.func @transform_3(%arg0: i32) -> (i32, i32, i32) {
    %c0_i32 = arith.constant 0 : i32
    %c0_i32_0 = arith.constant 0 : i32
    %c0_i32_1 = arith.constant 0 : i32
    %c0_i32_2 = arith.constant 0 : i32
    return %c0_i32, %c0_i32_0, %c0_i32_1 : i32, i32, i32
  }
  func.func @transform_4(%arg0: i32) -> (i32, i32) {
    %c0_i32 = arith.constant 0 : i32
    %c0_i32_0 = arith.constant 0 : i32
    %c0_i32_1 = arith.constant 0 : i32
    return %c0_i32, %c0_i32_0 : i32, i32
  }
  func.func @transform_5(%arg0: i32) -> (i32, i32, i32) {
    %c0_i32 = arith.constant 0 : i32
    %c0_i32_0 = arith.constant 0 : i32
    %c0_i32_1 = arith.constant 0 : i32
    %c0_i32_2 = arith.constant 0 : i32
    return %c0_i32, %c0_i32_0, %c0_i32_1 : i32, i32, i32
  }
  func.func @transform_6(%arg0: i32) -> (i32, i32) {
    %c0_i32 = arith.constant 0 : i32
    %c0_i32_0 = arith.constant 0 : i32
    %c0_i32_1 = arith.constant 0 : i32
    return %c0_i32, %c0_i32_0 : i32, i32
  }
  func.func @transform_7(%arg0: i32) -> (i32, i32) {
    %c0_i32 = arith.constant 0 : i32
    %c0_i32_0 = arith.constant 0 : i32
    %c0_i32_1 = arith.constant 0 : i32
    return %c0_i32, %c0_i32_0 : i32, i32
  }
  func.func @transform_8(%arg0: i32) -> (i32, i32) {
    %c0_i32 = arith.constant 0 : i32
    %c0_i32_0 = arith.constant 0 : i32
    %c0_i32_1 = arith.constant 0 : i32
    return %c0_i32, %c0_i32_0 : i32, i32
  }
  func.func @transform_9(%arg0: i32) -> (i32, i32) {
    %c0_i32 = arith.constant 0 : i32
    %c0_i32_0 = arith.constant 0 : i32
    %c0_i32_1 = arith.constant 0 : i32
    return %c0_i32, %c0_i32_0 : i32, i32
  }
  func.func @transform_10(%arg0: i32) -> (i32, i32) {
    %c0_i32 = arith.constant 0 : i32
    %c0_i32_0 = arith.constant 0 : i32
    %c0_i32_1 = arith.constant 0 : i32
    return %c0_i32, %c0_i32_0 : i32, i32
  }
  func.func @transform_11(%arg0: i32) -> (i32, i32, i32) {
    %c0_i32 = arith.constant 0 : i32
    %c0_i32_0 = arith.constant 0 : i32
    %c0_i32_1 = arith.constant 0 : i32
    return %arg0, %c0_i32, %c0_i32_0 : i32, i32, i32
  }
}

</mosaic_0001>

<bundles_post_ra>
// kernel: custom_model_forward.1
= control target key start
LH: loop header
LB: loop body
LE: loop exit
PB: predicated region body
PF: predicated region fallthrough
CT: control target
= control target key end

     0   :  { %s4175_s19 = smov 0   ;;  %s4981_s0 = inlined_call_operand.vmem [shape: f32[2,8,256], index: 0, kind: input, shape index: {}]   ;;  %s4982_s1 = inlined_call_operand.vmem [shape: f32[9,8,8], index: 1, kind: input, shape index: {}]   ;;  %s4983_s2 = inlined_call_operand.vmem [shape: f32[8,1], index: 2, kind: input, shape index: {}]   ;;  %s4984_s3 = inlined_call_operand.vmem [shape: f32[9,16,8], index: 3, kind: input, shape index: {}]   ;;  %s4985_s4 = inlined_call_operand.vmem [shape: f32[16,1], index: 4, kind: input, shape index: {}]   ;;  %s4986_s5 = inlined_call_operand.vmem [shape: f32[9,8,24], index: 5, kind: input, shape index: {}]   ;;  %s4987_s6 = inlined_call_operand.vmem [shape: f32[8,1], index: 6, kind: input, shape index: {}]   ;;  %s4988_s7 = inlined_call_operand.vmem [shape: f32[1,8], index: 7, kind: input, shape index: {}]   ;;  %s4989_s8 = inlined_call_operand.<no memory space> [shape: f32[1,1], index: 8, kind: input, shape index: {}]   ;;  %s4990_s9 = inlined_call_operand.vmem [shape: f32[256,64], index: 9, kind: input, shape index: {}]   ;;  %s4991_s10 = inlined_call_operand.vmem [shape: f32[64,256], index: 10, kind: input, shape index: {}]   ;;  %s4992_s11 = inlined_call_operand.vmem [shape: f32[2,1,256], index: 11, kind: output, shape index: {}]  }
   0x1   :  { %v16_v0 = vstv %s4989_s8 }
   0x2   :  { %17 = vst [vmem:[#allocation3] sm:$0x1] %v16_v0 }
   0x3 LB: > { %s3543_s20 = sadd.s32 4294967295, %s4093_s19   ;;  %p3547_p0 = scmp.ge.s32.totalorder %s4093_s19, 1  ;;  %s4093_s19 = sphi %s4175_s19, %s23_s19  }
   0x4   : > { %p339_p1 = scmp.lt.s32.totalorder %s4093_s19, 3 }
   0x6   : > { %p340_p2 = pnand %p3547_p0, %p339_p1 }
   0x7   : > { %vm432_vm0 = vcmask (!%p340_p2), 1048440   ;;  %p378_p3 = scmp.lt.s32.totalorder (!%p340_p2), %s3543_s20, 1  ;;  %vm434_vm1 = vcmask (!%p340_p2), 138240   ;;  %v4095_v1 = vmov (!%p340_p2), 0.0   ;;  %vm1411_vm2 = vcmask (!%p340_p2), 1048504   ;;  %s4096_s24 = smov (!%p340_p2), 16  }
   0x8   : > { %343 = sbr.rel (%p340_p2) target bundleno = 2139 (0x85b), region = 64  ;;  %433 = vst.msk [vmem:[#allocation2] sm:$0xff] (!%p340_p2), %vm432_vm0, %v4095_v1  ;;  %2358 = vst.msk [vmem:[#allocation2 + $0x20] sm:$0xff] (!%p340_p2), %vm432_vm0, %v4095_v1  ;;  %544 = vmatprep.mubr.f32.mxu0 (!%p340_p2), %v4095_v1  ;;  %s4097_s25 = smov (!%p340_p2), 17   ;;  %v1257_v6 = vld [vmem:[%s4983_s2] sm:$0xff] (!%p340_p2)  ;;  %v4104_v7 = vmov (!%p340_p2), 0   ;;  %v387_v8 = vlaneseq (!%p340_p2) }
   0x9   : > { %2359 = vst.msk [vmem:[#allocation2 + $0x40] sm:$0xff] (!%p340_p2), %vm432_vm0, %v4095_v1  ;;  %s4098_s26 = smov (!%p340_p2), 15   ;;  %s4099_s27 = smov (!%p340_p2), 1   ;;  %3955 = vset.pattern.permute.xlu0 (!%p340_p2), %v4104_v7  ;;  %3966 = vset.pattern.permute.xlu1 (!%p340_p2), %v4104_v7  ;;  %vm471_vm3 = vcmask (!%p340_p2), 130048   ;;  %v3551_v16 = vld [vmem:[%s4982_s1 + $0x8] sm:$0xff] (!%p340_p2)  ;;  %vm476_vm4 = vcmask (!%p340_p2), 64512  }
   0xa   : > { %435 = vst.msk [vmem:[#allocation2 + $0x18] sm:$0xff] (!%p340_p2), %vm434_vm1, %v4095_v1  ;;  %1269 = vst.msk [vmem:[#allocation2 + $0x58] sm:$0xff] (!%p340_p2), %vm434_vm1, %v4095_v1  ;;  %s4100_s28 = smov (!%p340_p2), 127   ;;  %s4101_s29 = smov (!%p340_p2), 113   ;;  %v4254_v9 = vand.u32 (!%p340_p2), 127, %v387_v8  ;;  %vm635_vm7 = vcmask (!%p340_p2), 121856  }
   0xb   : > { %2361 = vst.msk [vmem:[#allocation2 + $0x38] sm:$0xff] (!%p340_p2), %vm434_vm1, %v4095_v1  ;;  %s4102_s30 = smov (!%p340_p2), 112   ;;  %s4103_s12 = smov (!%p340_p2), 111   ;;  %v462_v27 = vld [vmem:[%s4982_s1] sm:$0xff] (!%p340_p2)  ;;  %vm726_vm10 = vcmask (!%p340_p2), 7168   ;;  %v3556_v36 = vld [vmem:[%s4982_s1 + $0x10] sm:$0xff] (!%p340_p2) }
   0xc   : > { %v389_v10 = vadd.s32 (!%p340_p2), 128, %v4254_v9  ;;  %v394_v17 = vand.u32 (!%p340_p2), 15, %v4254_v9  ;;  %vm901_vm11 = vcmask (!%p340_p2), 1039360   ;;  %v3560_v42 = vld [vmem:[%s4982_s1 + $0x18] sm:$0xff] (!%p340_p2)  ;;  %vm992_vm12 = vcmask (!%p340_p2), 924672   ;;  %v3564_v47 = vld [vmem:[%s4982_s1 + $0x20] sm:$0xff] (!%p340_p2) }
   0xd   : > { %vm4994_vm13 = vcmask (!%p340_p2), 916480   ;;  %v3566_v53 = vld [vmem:[%s4982_s1 + $0x28] sm:$0xff] (!%p340_p2)  ;;  %vm4993_vm14 = vcmask (!%p340_p2), 908288   ;;  %v3570_v58 = vld [vmem:[%s4982_s1 + $0x30] sm:$0xff] (!%p340_p2)  ;;  %v3574_v63 = vld [vmem:[%s4982_s1 + $0x38] sm:$0xff] (!%p340_p2)  ;;  %s4105_s17 = smov (!%p340_p2), 8  }
   0xe   : > { %v401_v13 = vand.u32 (!%p340_p2), 15, %v389_v10  ;;  %vm4269_vm6 = vcmp.ge.s32.totalorder (!%p340_p2), %v394_v17, 1  ;;  %vm4287_vm9 = vcmp.lt.s32.totalorder (!%p340_p2), %v394_v17, 15  ;;  %v1327_v17 = vld [vmem:[%s4990_s9 + $0x90] sm:$0xff] (!%p340_p2)  ;;  %s4106_s18 = smov (!%p340_p2), 9   ;;  %vm1413_vm15 = vcmask (!%p340_p2), 597504  }
   0xf   : > { %s5028_s20 = smov (!%p378_p3, %s3543_s20), 1  ;;  %v440_v3 = vld [vmem:[#allocation2] sm:$0xff]  ;;  %s4109_s15 = smov 121   ;;  %v3390_v31 = vshrl.u32 %v387_v8, 7 }
  0x10   : > { %s3678_s8 = sshll.u32 %s5028_s20, 4  ;;  %465 = vrot.lane.b32.xlu1 %v440_v3, %s4096_s24  ;;  %1412 = vst.msk [vmem:[#allocation2] sm:$0xff] %vm1411_vm2, %v4095_v1  ;;  %vm4263_vm5 = vcmp.ge.s32.totalorder %v401_v13, 1  ;;  %vm4282_vm8 = vcmp.lt.s32.totalorder %v401_v13, 15  ;;  %v1309_v13 = vld [vmem:[%s4990_s9] sm:$0xff]  ;;  %s4110_s16 = smov 119  }
  0x11   : > { %s382_s23 = scalar_lea.vmem %s4981_s0, %s3678_s8  ;;  %v891_v5 = vld [vmem:[#allocation2 + $0x18] sm:$0xff]  ;;  %s4107_s8 = smov 7   ;;  %vm1427_vm2 = vcmask 72704   ;;  %v3382_v28 = vld [vmem:[%s4988_s7] sm:$0x1] }
  0x12   : > { %v4202_v2 = vld [vmem:[%s382_s23] sm:$0xff]  ;;  %v4207_v4 = vld [vmem:[%s382_s23 + $0x8] sm:$0xff]  ;;  %2360 = vst.msk [vmem:[#allocation2 + $0x18] sm:$0xff] %vm434_vm1, %v4095_v1  ;;  %v4361_v7 = vld [vmem:[#allocation2 + $0x58] sm:$0xff]  ;;  %s4108_s23 = smov 120  }
  0x13   : > { %438 = vst [vmem:[#allocation2 + $0x8] sm:$0xff] %v4202_v2  ;;  %467 = vrot.lane.b32.xlu0 %v4202_v2, %s4096_s24 }
  0x14   : > { %452 = vrot.lane.b32.xlu1 %v4202_v2, %s4097_s25  ;;  %1414 = vst.msk [vmem:[#allocation2 + $0x8] sm:$0xff] %vm1413_vm15, %v4095_v1 }
  0x17   : > { %469 = vrot.lane.b32.xlu0 %v4207_v4, %s4096_s24 }
  0x18   : > { %450 = vrot.lane.b32.xlu1 %v440_v3, %s4097_s25 }
  0x1b   : > { %454 = vrot.lane.b32.xlu0 %v4207_v4, %s4097_s25 }
  0x1c   : > { %633 = vrot.lane.b32.xlu1 %v4207_v4, %s4098_s26 }
  0x1f   : > { %631 = vrot.lane.b32.xlu0 %v4202_v2, %s4098_s26 }
  0x20   : > { %722 = vrot.lane.b32.xlu1 %v4202_v2, %s4099_s27 }
  0x23   : > { %629 = vrot.lane.b32.xlu0 %v440_v3, %s4098_s26 }
  0x24   : > { %720 = vrot.lane.b32.xlu1 %v440_v3, %s4099_s27 }
  0x27   : > { %724 = vrot.lane.b32.xlu0 %v4207_v4, %s4099_s27 }
  0x28   : > { %899 = vrot.lane.b32.xlu1 %v891_v5, %s4100_s28 }
  0x2b   : > { %897 = vrot.lane.b32.xlu0 %v4207_v4, %s4100_s28 }
  0x2c   : > { %988 = vrot.lane.b32.xlu1 %v4207_v4, %s4101_s29 }
  0x2f   : > { %895 = vrot.lane.b32.xlu0 %v4202_v2, %s4100_s28 }
  0x30   : > { %986 = vrot.lane.b32.xlu1 %v4202_v2, %s4101_s29 }
  0x33   : > { %990 = vrot.lane.b32.xlu0 %v891_v5, %s4101_s29 }
  0x34   : > { %1083 = vrot.lane.b32.xlu1 %v891_v5, %s4102_s30 }
  0x37   : > { %1081 = vrot.lane.b32.xlu0 %v4207_v4, %s4102_s30 }
  0x38   : > { %1168 = vrot.lane.b32.xlu1 %v4207_v4, %s4103_s12 }
  0x3b   : > { %1079 = vrot.lane.b32.xlu0 %v4202_v2, %s4102_s30 }
  0x3c   : > { %1166 = vrot.lane.b32.xlu1 %v4202_v2, %s4103_s12 }
  0x3f   : > { %1170 = vrot.lane.b32.xlu0 %v891_v5, %s4103_s12 }
  0x43   : > { %1260 = vperm.xlu0 %3955, %v1257_v6  }
  0x82   : > { %v466_v12 = vpop.permute.xlu1 %465 }
  0x85   : > { %v468_v11 = vpop.permute.xlu0 %467 }
  0x86   : > { %v453_v18 = vpop.permute.xlu1 %452  ;;  %v472_v19 = vsel %vm471_vm3, %v466_v12, %v468_v11  ;;  %v1326_v12 = vld [vmem:[%s4990_s9 + $0x88] sm:$0xff] }
  0x89   : > { %v470_v14 = vpop.permute.xlu0 %469 }
  0x8a   : > { %v473_v15 = vsel %vm471_vm3, %v468_v11, %v470_v14  ;;  %v451_v24 = vpop.permute.xlu1 %450  ;;  %v1325_v11 = vld [vmem:[%s4990_s9 + $0x80] sm:$0xff] }
  0x8b   : > { %480 = vmatprep.subr.mxu0 %v473_v15  ;;  %v456_v25 = vsel %vm434_vm1, %v451_v24, %v453_v18  ;;  %v3786_v15 = vpack.c.bf16 %v1326_v12, %v1325_v11  ;;  %v1311_v24 = vld [vmem:[%s4990_s9 + $0x10] sm:$0xff] }
  0x8c   : > { %481 = vmatpush1.msra.mxu0 %v472_v19 }
  0x8d   : > { %3552 = vmatmul.mubr.msk.f32.vlgmr.msra.gmra.mrb[0].mxu0 %vm476_vm4, %v3551_v16  ;;  %v455_v21 = vpop.permute.xlu0 %454  ;;  %v1310_v16 = vld [vmem:[%s4990_s9 + $0x8] sm:$0xff]  ;;  %3787 = vmatprep.subr.bf16.mxu1 %v3786_v15 }
  0x8e   : > { %v457_v22 = vsel %vm434_vm1, %v453_v18, %v455_v21  ;;  %618 = vmatprep.mubr.f32.mxu0 %v4095_v1  ;;  %v634_v29 = vpop.permute.xlu1 %633  ;;  %v1328_v18 = vld [vmem:[%s4990_s9 + $0x98] sm:$0xff]  ;;  %v3788_v21 = vpack.c.bf16 %v1310_v16, %v1309_v13 }
  0x8f   : > { %3553 = vmatprep.subr.msk.mxu0 %vm4263_vm5, %v457_v22  ;;  %v3790_v22 = vpack.c.bf16 %v1328_v18, %v1327_v17 }
  0x90   : > { %3554 = vmatpush1.msk.msra.mxu0 %vm4269_vm6, %v456_v25  ;;  %v1312_v25 = vld [vmem:[%s4990_s9 + $0x18] sm:$0xff]  ;;  %3789 = vmatpush3.bf16.msra.mxu1 %v3788_v21 }
  0x91   : > { %v632_v26 = vpop.permute.xlu0 %631  ;;  %3791 = vmatprep.subr.bf16.mxu1 %v3790_v22 }
  0x92   : > { %v637_v30 = vsel %vm635_vm7, %v632_v26, %v634_v29  ;;  %v723_v34 = vpop.permute.xlu1 %722 }
  0x93   : > { %3557 = vmatprep.subr.msk.mxu0 %vm4282_vm8, %v637_v30  ;;  %v3792_v30 = vpack.c.bf16 %v1312_v25, %v1311_v24 }
  0x95   : > { %3555 = vmatmul.mubr.msk.f32.vlgmr.msra.gmra.mrb[0].mxu0 %vm476_vm4, %v462_v27  ;;  %v630_v32 = vpop.permute.xlu0 %629  ;;  %v1330_v27 = vld [vmem:[%s4990_s9 + $0xa8] sm:$0xff]  ;;  %3793 = vmatpush3.bf16.msra.mxu1 %v3792_v30 }
  0x96   : > { %v636_v33 = vsel %vm635_vm7, %v630_v32, %v632_v26  ;;  %711 = vmatprep.mubr.f32.mxu0 %v4095_v1  ;;  %v721_v38 = vpop.permute.xlu1 %720  ;;  %v1329_v26 = vld [vmem:[%s4990_s9 + $0xa0] sm:$0xff] }
  0x97   : > { %3558 = vmatpush1.msk.msra.mxu0 %vm4287_vm9, %v636_v33  ;;  %v727_v39 = vsel %vm726_vm10, %v721_v38, %v723_v34  ;;  %v3794_v32 = vpack.c.bf16 %v1330_v27, %v1329_v26  ;;  %v1313_v33 = vld [vmem:[%s4990_s9 + $0x20] sm:$0xff] }
  0x99   : > { %v725_v35 = vpop.permute.xlu0 %724  ;;  %3795 = vmatprep.subr.bf16.mxu1 %v3794_v32  ;;  %v3580_v32 = vld [vmem:[%s4984_s3 + $0x10] sm:$0xff] }
  0x9a   : > { %v728_v37 = vsel %vm726_vm10, %v723_v34, %v725_v35  ;;  %v900_v41 = vpop.permute.xlu1 %899  ;;  %v1314_v34 = vld [vmem:[%s4990_s9 + $0x28] sm:$0xff]  ;;  %v1331_v35 = vld [vmem:[%s4990_s9 + $0xb0] sm:$0xff] }
  0x9b   : > { %3561 = vmatprep.subr.msk.mxu0 %vm4263_vm5, %v728_v37  ;;  %v3796_v37 = vpack.c.bf16 %v1314_v34, %v1313_v33 }
  0x9d   : > { %3559 = vmatmul.mubr.msk.f32.vlgmr.msra.gmra.mrb[0].mxu0 %vm476_vm4, %v3556_v36  ;;  %v898_v40 = vpop.permute.xlu0 %897  ;;  %v1332_v36 = vld [vmem:[%s4990_s9 + $0xb8] sm:$0xff]  ;;  %3797 = vmatpush3.bf16.msra.mxu1 %v3796_v37 }
  0x9e   : > { %3562 = vmatpush1.msk.msra.mxu0 %vm4269_vm6, %v727_v39  ;;  %802 = vmatprep.mubr.f32.mxu0 %v4095_v1  ;;  %v903_v43 = vsel %vm901_vm11, %v898_v40, %v900_v41  ;;  %v989_v45 = vpop.permute.xlu1 %988  ;;  %v3798_v38 = vpack.c.bf16 %v1332_v36, %v1331_v35  ;;  %v1315_v39 = vld [vmem:[%s4990_s9 + $0x30] sm:$0xff]  ;;  %v1333_v41 = vld [vmem:[%s4990_s9 + $0xc0] sm:$0xff] }
  0x9f   : > { %816 = vmatprep.subr.mxu0 %v4207_v4  ;;  %v2238_v36 = vld [vmem:[%s4985_s4] sm:$0xff] }
  0xa0   : > { %3799 = vmatprep.subr.bf16.mxu1 %v3798_v38  ;;  %v2365_v38 = vld [vmem:[#allocation2 + $0x20] sm:$0xff] }
  0xa1   : > { %v896_v44 = vpop.permute.xlu0 %895 }
  0xa2   : > { %v902_v48 = vsel %vm901_vm11, %v896_v44, %v898_v40  ;;  %v987_v50 = vpop.permute.xlu1 %986  ;;  %v1316_v40 = vld [vmem:[%s4990_s9 + $0x38] sm:$0xff] }
  0xa3   : > { %v993_v54 = vsel %vm992_vm12, %v987_v50, %v989_v45 }
  0xa5   : > { %3563 = vmatmul.mubr.msk.f32.vlgmr.msra.gmra.mrb[0].mxu0 %vm476_vm4, %v3560_v42  ;;  %v991_v46 = vpop.permute.xlu0 %990  ;;  %v1334_v42 = vld [vmem:[%s4990_s9 + $0xc8] sm:$0xff] }
  0xa6   : > { %817 = vmatpush1.msra.mxu0 %v4202_v2  ;;  %880 = vmatprep.mubr.f32.mxu0 %v4095_v1  ;;  %v994_v49 = vsel %vm992_vm12, %v989_v45, %v991_v46  ;;  %v1084_v52 = vpop.permute.xlu1 %1083  ;;  %v3576_v2 = vld [vmem:[%s4982_s1 + $0x40] sm:$0xff]  ;;  %v3802_v44 = vpack.c.bf16 %v1334_v42, %v1333_v41  ;;  %v1318_v46 = vld [vmem:[%s4990_s9 + $0x48] sm:$0xff] }
  0xa7   : > { %3567 = vmatprep.subr.msk.mxu0 %vm4282_vm8, %v903_v43  ;;  %v3800_v43 = vpack.c.bf16 %v1316_v40, %v1315_v39  ;;  %v1317_v45 = vld [vmem:[%s4990_s9 + $0x40] sm:$0xff]  ;;  %v2239_v40 = vld [vmem:[%s4985_s4 + $0x8] sm:$0xff] }
  0xa8   : > { %v4516_v41 = vld [vmem:[#allocation2 + $0x40] sm:$0xff] }
  0xa9   : > { %v1082_v51 = vpop.permute.xlu0 %1081  ;;  %3801 = vmatpush3.bf16.msra.mxu1 %v3800_v43  ;;  %v422_v43 = vand.u32 7, %v4254_v9 }
  0xaa   : > { %v1087_v55 = vsel %vm4994_vm13, %v1082_v51, %v1084_v52  ;;  %v1169_v59 = vpop.permute.xlu1 %1168  ;;  %3803 = vmatprep.subr.bf16.mxu1 %v3802_v44  ;;  %v1320_v52 = vld [vmem:[%s4990_s9 + $0x58] sm:$0xff] }
  0xab   : > { %vm4534_vm15 = vcmp.ge.s32.totalorder %v422_v43, 1 }
  0xad   : > { %3565 = vmatmul.mubr.msk.f32.vlgmr.msra.gmra.mrb[0].mxu0 %vm476_vm4, %v3564_v47  ;;  %v1080_v56 = vpop.permute.xlu0 %1079  ;;  %v1335_v47 = vld [vmem:[%s4990_s9 + $0xd0] sm:$0xff] }
  0xae   : > { %3568 = vmatpush1.msk.msra.mxu0 %vm4287_vm9, %v902_v48  ;;  %977 = vmatprep.mubr.f32.mxu0 %v4095_v1  ;;  %v1086_v60 = vsel %vm4994_vm13, %v1080_v56, %v1082_v51  ;;  %v1167_v62 = vpop.permute.xlu1 %1166  ;;  %v1336_v48 = vld [vmem:[%s4990_s9 + $0xd8] sm:$0xff]  ;;  %v1319_v51 = vld [vmem:[%s4990_s9 + $0x50] sm:$0xff] }
  0xaf   : > { %3571 = vmatprep.subr.msk.mxu0 %vm4263_vm5, %v994_v49  ;;  %v1173_v0 = vsel %vm4993_vm14, %v1167_v62, %v1169_v59  ;;  %v3804_v49 = vpack.c.bf16 %v1318_v46, %v1317_v45  ;;  %v3806_v50 = vpack.c.bf16 %v1336_v48, %v1335_v47  ;;  %v3581_v47 = vld [vmem:[%s4984_s3 + $0x18] sm:$0xff]  ;;  %v1431_v48 = vld [vmem:[%s4984_s3] sm:$0xff] }
  0xb1   : > { %v1171_v57 = vpop.permute.xlu0 %1170  ;;  %3805 = vmatpush3.bf16.msra.mxu1 %v3804_v49 }
  0xb2   : > { %v1174_v61 = vsel %vm4993_vm14, %v1169_v59, %v1171_v57  ;;  %3807 = vmatprep.subr.bf16.mxu1 %v3806_v50  ;;  %v1321_v57 = vld [vmem:[%s4990_s9 + $0x60] sm:$0xff]  ;;  %vm1610_vm14 = vcmask 56320  }
  0xb5   : > { %3569 = vmatmul.mubr.msk.f32.vlgmr.msra.gmra.mrb[0].mxu0 %vm476_vm4, %v3566_v53  ;;  %v1337_v53 = vld [vmem:[%s4990_s9 + $0xe0] sm:$0xff] }
  0xb6   : > { %3572 = vmatpush1.msk.msra.mxu0 %vm4269_vm6, %v993_v54  ;;  %1068 = vmatprep.mubr.f32.mxu0 %v4095_v1  ;;  %v1338_v54 = vld [vmem:[%s4990_s9 + $0xe8] sm:$0xff] }
  0xb7   : > { %1093 = vmatprep.subr.mxu0 %v1087_v55  ;;  %v3808_v55 = vpack.c.bf16 %v1320_v52, %v1319_v51  ;;  %v3810_v56 = vpack.c.bf16 %v1338_v54, %v1337_v53 }
  0xb9   : > { %3809 = vmatpush3.bf16.msra.mxu1 %v3808_v55  ;;  %v1432_v55 = vld [vmem:[%s4984_s3 + $0x8] sm:$0xff] }
  0xba   : > { %3811 = vmatprep.subr.bf16.mxu1 %v3810_v56  ;;  %v3587_v56 = vld [vmem:[%s4984_s3 + $0x20] sm:$0xff] }
  0xbd   : > { %3573 = vmatmul.mubr.msk.f32.vlgmr.msra.gmra.mrb[0].mxu0 %vm476_vm4, %v3570_v58  ;;  %v1322_v58 = vld [vmem:[%s4990_s9 + $0x68] sm:$0xff] }
  0xbe   : > { %1094 = vmatpush1.msra.mxu0 %v1086_v60  ;;  %1157 = vmatprep.mubr.f32.mxu0 %v4095_v1  ;;  %v3812_v59 = vpack.c.bf16 %v1322_v58, %v1321_v57  ;;  %v1339_v60 = vld [vmem:[%s4990_s9 + $0xf0] sm:$0xff] }
  0xbf   : > { %3577 = vmatprep.subr.msk.mxu0 %vm4282_vm8, %v1174_v61  ;;  %v1340_v61 = vld [vmem:[%s4990_s9 + $0xf8] sm:$0xff] }
  0xc0   : > { %3813 = vmatpush3.bf16.msra.mxu1 %v3812_v59  ;;  %v3814_v62 = vpack.c.bf16 %v1340_v61, %v1339_v60  ;;  %v3588_v60 = vld [vmem:[%s4984_s3 + $0x28] sm:$0xff]  ;;  %v3592_v61 = vld [vmem:[%s4984_s3 + $0x30] sm:$0xff] }
  0xc2   : > { %v1261_v3 = vpop.permute.xlu0 %1260  ;;  %3815 = vmatprep.subr.bf16.mxu1 %v3814_v62  ;;  %v3593_v62 = vld [vmem:[%s4984_s3 + $0x38] sm:$0xff] }
  0xc5   : > { %3575 = vmatmul.mubr.msk.f32.vlgmr.msra.gmra.mrb[0].mxu0 %vm476_vm4, %v3574_v63  ;;  %v1323_v63 = vld [vmem:[%s4990_s9 + $0x70] sm:$0xff] }
  0xc6   : > { %3578 = vmatpush1.msk.msra.mxu0 %vm4287_vm9, %v1173_v0  ;;  %1248 = vmatprep.mubr.f32.mxu0 %v4095_v1  ;;  %v1324_v0 = vld [vmem:[%s4990_s9 + $0x78] sm:$0xff] }
  0xcd   : > { %3579 = vmatmul.mubr.msk.f32.vlgmr.msra.gmra.mrb[0].mxu0 %vm476_vm4, %v3576_v2  ;;  %v3816_v2 = vpack.c.bf16 %v1324_v0, %v1323_v63  ;;  %v3597_v63 = vld [vmem:[%s4984_s3 + $0x40] sm:$0xff] }
  0xce   : > { %2517 = vmatprep.mubr.f32.mxu0 %v4095_v1 }
  0xcf   : > { %3817 = vmatpush3.bf16.msra.mxu1 %v3816_v2  ;;  %v3598_v2 = vld [vmem:[%s4984_s3 + $0x48] sm:$0xff] }
 0x1a0   : > { %v1250_v4 = vpop.f32.mrb[0].mxu0 }
 0x1a1   : > { %v1263_v5 = vadd.f32 %v1261_v3, %v1250_v4  ;;  %v1252_v6 = vpop.f32.mrb[1].mxu0 }
 0x1a2   : > { %v1264_v10 = vadd.f32 %v1261_v3, %v1252_v6  ;;  %v1417_v6 = vld [vmem:[#allocation2] sm:$0xff] }
 0x1a3   : > { %v4372_v14 = vmax.f32 %v1263_v5, 0.0  ;;  %2357 = vst.msk [vmem:[#allocation2] sm:$0xff] %vm432_vm0, %v4095_v1  ;;  %vm1415_vm0 = vcmask 523264  }
 0x1a4   : > { %v4383_v19 = vmax.f32 %v1264_v10, 0.0 }
 0x1a6   : > { %v3956_v29 = vpack.i.bf16 %v4361_v7, %v4383_v19 }
 0x1a8   : > { %3957 = vrot.lane.b32.xlu1 %v3956_v29, %s4100_s28 }
 0x1aa   : > { %v2362_v37 = vld [vmem:[#allocation2] sm:$0xff] }
 0x1ab   : > { %v4497_v39 = vpack.i.bf16 %v2365_v38, %v2362_v37  ;;  %v2262_v38 = vld [vmem:[%s4991_s10 + $0x40] sm:$0xff] }
 0x1ac   : > { %1278 = vrot.lane.b32.xlu1 %v4372_v14, %s4100_s28 }
 0x21a   : > { %v3958_v3 = vpop.permute.xlu1 %3957 }
 0x21b   : > { %v3960_v4 = vunpack.i.h.bf16 %v3958_v3  ;;  %v3959_v5 = vunpack.i.l.bf16 %v3958_v3  ;;  %v3601_v3 = vld [vmem:[%s4984_s3 + $0x50] sm:$0xff] }
 0x21d   : > { %v1293_v10 = vmax.f32 %v4361_v7, %v3960_v4  ;;  %v1285_v11 = vsel %vm901_vm11, %v3959_v5, %v3960_v4 }
 0x21e   : > { %v1279_v12 = vpop.permute.xlu1 %1278  ;;  %v1292_v13 = vmax.f32 %v4383_v19, %v1285_v11  ;;  %v3607_v11 = vld [vmem:[%s4984_s3 + $0x68] sm:$0xff] }
 0x21f   : > { %v1284_v15 = vsel %vm901_vm11, %v1279_v12, %v3959_v5  ;;  %v3602_v5 = vld [vmem:[%s4984_s3 + $0x58] sm:$0xff]  ;;  %v3611_v12 = vld [vmem:[%s4984_s3 + $0x70] sm:$0xff] }
 0x220   : > { %v1288_v16 = vmax.f32 %v4372_v14, %v1284_v15  ;;  %v3961_v17 = vpack.i.bf16 %v1293_v10, %v1292_v13  ;;  %v2255_v15 = vld [vmem:[%s4991_s10 + $0x8] sm:$0xff] }
 0x222   : > { %3962 = vrot.lane.b32.xlu0 %v3961_v17, %s4102_s30  ;;  %1297 = vrot.lane.b32.xlu1 %v1288_v16, %s4102_s30  ;;  %v3612_v17 = vld [vmem:[%s4984_s3 + $0x78] sm:$0xff] }
 0x226   : > { %1436 = vrot.lane.b32.xlu0 %v1417_v6, %s4105_s17 }
 0x22a   : > { %1423 = vrot.lane.b32.xlu0 %v1417_v6, %s4106_s18 }
 0x22e   : > { %1606 = vrot.lane.b32.xlu0 %v1417_v6, %s4107_s8 }
 0x232   : > { %1700 = vrot.lane.b32.xlu0 %v1417_v6, %s4099_s27  ;;  %v3606_v6 = vld [vmem:[%s4984_s3 + $0x60] sm:$0xff] }
 0x294   : > { %v3963_v18 = vpop.permute.xlu0 %3962  ;;  %v1298_v24 = vpop.permute.xlu1 %1297 }
 0x295   : > { %v3965_v21 = vunpack.i.h.bf16 %v3963_v18  ;;  %v3964_v22 = vunpack.i.l.bf16 %v3963_v18  ;;  %v3615_v18 = vld [vmem:[%s4984_s3 + $0x80] sm:$0xff] }
 0x297   : > { %v1303_v25 = vsel %vm4994_vm13, %v1298_v24, %v3964_v22  ;;  %v1304_v26 = vsel %vm4994_vm13, %v3964_v22, %v3965_v21  ;;  %vm4544_vm13 = vcmp.lt.s32.totalorder %v422_v43, 7  ;;  %v2254_v22 = vld [vmem:[%s4991_s10] sm:$0xff]  ;;  %v2256_v24 = vld [vmem:[%s4991_s10 + $0x10] sm:$0xff]  ;;  %v2267_v43 = vld [vmem:[%s4991_s10 + $0x68] sm:$0xff] }
 0x298   : > { %v1307_v27 = vmax.f32 %v1288_v16, %v1303_v25  ;;  %v1308_v29 = vmax.f32 %v1292_v13, %v1304_v26  ;;  %v1437_v42 = vpop.permute.xlu0 %1436  ;;  %v2257_v16 = vld [vmem:[%s4991_s10 + $0x18] sm:$0xff]  ;;  %v2259_v25 = vld [vmem:[%s4991_s10 + $0x28] sm:$0xff] }
 0x299   : > { %v3818_v21 = vpack.c.bf16 %v2257_v16, %v2255_v15  ;;  %v2261_v26 = vld [vmem:[%s4991_s10 + $0x38] sm:$0xff] }
 0x29a   : > { %1405 = vmatprep.mubr.f32.mxu1 %v1308_v29  ;;  %v3820_v29 = vpack.c.bf16 %v2256_v24, %v2254_v22 }
 0x29b   : > { %1406 = vmatmul.mubr.f32.vlgmr.msra.gmra.mrb[0].mxu1 %v1307_v27  ;;  %v3616_v27 = vld [vmem:[%s4984_s3 + $0x88] sm:$0xff] }
 0x29c   : > { %3743 = vmatprep.mubr.msk.f32.mxu1 %vm476_vm4, %v3580_v32  ;;  %v1424_v44 = vpop.permute.xlu0 %1423  ;;  %v2258_v32 = vld [vmem:[%s4991_s10 + $0x20] sm:$0xff] }
 0x2a0   : > { %v1607_v51 = vpop.permute.xlu0 %1606 }
 0x2a4   : > { %v1701_v57 = vpop.permute.xlu0 %1700 }
 0x36e   : > { %v3711_v30 = vpop.f32.mrb[0].mxu1 }
 0x36f   : > { %v3712_v33 = vpop.f32.mrb[1].mxu1 }
 0x370   : > { %v3713_v34 = vadd.f32 %v3712_v33, %v3711_v30  ;;  %v3822_v30 = vpack.c.bf16 %v2261_v26, %v2259_v25  ;;  %v2260_v33 = vld [vmem:[%s4991_s10 + $0x30] sm:$0xff] }
 0x372   : > { %1416 = vst.msk [vmem:[#allocation2 + $0x8] sm:$0xff] %vm1415_vm0, %v3713_v34  ;;  %v2263_v34 = vld [vmem:[%s4991_s10 + $0x48] sm:$0xff] }
 0x379   : > { %v4486_v35 = vld [vmem:[#allocation2 + $0x8] sm:$0xff] }
 0x37a   : > { %1879 = vrot.lane.b32.xlu0 %v4486_v35, %s4100_s28  ;;  %1438 = vrot.lane.b32.xlu1 %v4486_v35, %s4105_s17 }
 0x37e   : > { %2062 = vrot.lane.b32.xlu0 %v4486_v35, %s4108_s23  ;;  %1425 = vrot.lane.b32.xlu1 %v4486_v35, %s4106_s18 }
 0x382   : > { %2242 = vperm.xlu0 %3955, %v2238_v36   ;;  %1608 = vrot.lane.b32.xlu1 %v4486_v35, %s4107_s8  ;;  %v3824_v36 = vpack.c.bf16 %v2260_v33, %v2258_v32 }
 0x386   : > { %3968 = vrot.lane.b32.xlu0 %v4497_v39, %s4096_s24  ;;  %1702 = vrot.lane.b32.xlu1 %v4486_v35, %s4099_s27 }
 0x38a   : > { %2435 = vrot.lane.b32.xlu0 %v4383_v19, %s4096_s24  ;;  %1969 = vrot.lane.b32.xlu1 %v4486_v35, %s4109_s15 }
 0x38e   : > { %3973 = vrot.lane.b32.xlu0 %v4497_v39, %s4097_s25  ;;  %2148 = vrot.lane.b32.xlu1 %v4486_v35, %s4110_s16 }
 0x392   : > { %2396 = vrot.lane.b32.xlu0 %v4383_v19, %s4097_s25  ;;  %2247 = vperm.xlu1 %3966, %v2239_v40   ;;  %v2264_v40 = vld [vmem:[%s4991_s10 + $0x50] sm:$0xff] }
 0x396   : > { %2433 = vrot.lane.b32.xlu1 %v4372_v14, %s4096_s24  ;;  %3978 = vrot.lane.b32.xlu0 %v4497_v39, %s4098_s26 }
 0x39a   : > { %2431 = vrot.lane.b32.xlu1 %v4516_v41, %s4096_s24 }
 0x39e   : > { %2394 = vrot.lane.b32.xlu1 %v4372_v14, %s4097_s25 }
 0x3a2   : > { %2392 = vrot.lane.b32.xlu1 %v4516_v41, %s4097_s25 }
 0x3a6   : > { %2612 = vrot.lane.b32.xlu1 %v4372_v14, %s4098_s26 }
 0x3ec   : > { %v1439_v45 = vpop.permute.xlu1 %1438  ;;  %v1880_v0 = vpop.permute.xlu0 %1879 }
 0x3ed   : > { %v1440_v46 = vsel %vm476_vm4, %v1437_v42, %v1439_v45  ;;  %v3828_v42 = vpack.c.bf16 %v2264_v40, %v2262_v38 }
 0x3ee   : > { %3741 = vmatprep.subr.mxu1 %v1440_v46 }
 0x3ef   : > { %3742 = vmatpush3.msra.mxu1 %v1440_v46  ;;  %v2266_v46 = vld [vmem:[%s4991_s10 + $0x60] sm:$0xff] }
 0x3f0   : > { %3744 = vmatmul.mubr.msk.f32.vlgmr.msra.gmra.mrb[2].mxu1 %vm476_vm4, %v3581_v47  ;;  %v1426_v9 = vpop.permute.xlu1 %1425  ;;  %v2063_v10 = vpop.permute.xlu0 %2062  ;;  %v2268_v47 = vld [vmem:[%s4991_s10 + $0x70] sm:$0xff] }
 0x3f1   : > { %v1428_v50 = vsel %vm1427_vm2, %v1424_v44, %v1426_v9  ;;  %3748 = vmatprep.mubr.msk.f32.mxu1 %vm476_vm4, %v1431_v48  ;;  %v2269_v44 = vld [vmem:[%s4991_s10 + $0x78] sm:$0xff]  ;;  %v3832_v48 = vpack.c.bf16 %v2268_v47, %v2266_v46  ;;  %vm5021_vm2 = vcmask 908288  }
 0x3f2   : > { %3746 = vmatprep.subr.msk.mxu1 %vm4534_vm15, %v1428_v50  ;;  %v3830_v45 = vpack.c.bf16 %v2269_v44, %v2267_v43 }
 0x3f3   : > { %3747 = vmatpush3.msk.msra.mxu1 %vm4534_vm15, %v1428_v50 }
 0x3f4   : > { %v1609_v53 = vpop.permute.xlu1 %1608 }
 0x3f5   : > { %v1611_v54 = vsel %vm1610_vm14, %v1607_v51, %v1609_v53  ;;  %vm4792_vm14 = vmpackc.low %vm4263_vm5, %vm4263_vm5 }
 0x3f6   : > { %3751 = vmatprep.subr.msk.mxu1 %vm4544_vm13, %v1611_v54 }
 0x3f8   : > { %3749 = vmatmul.mubr.msk.f32.vlgmr.msra.gmra.mrb[2].mxu1 %vm476_vm4, %v1432_v55  ;;  %v1703_v58 = vpop.permute.xlu1 %1702 }
 0x3f9   : > { %3752 = vmatpush3.msk.msra.mxu1 %vm4544_vm13, %v1611_v54  ;;  %v1704_v59 = vsel %vm726_vm10, %v1701_v57, %v1703_v58  ;;  %3753 = vmatprep.mubr.msk.f32.mxu1 %vm476_vm4, %v3587_v56 }
 0x3fa   : > { %3756 = vmatprep.subr.msk.mxu1 %vm4534_vm15, %v1704_v59 }
 0x3fc   : > { %v1970_v4 = vpop.permute.xlu1 %1969 }
 0x400   : > { %3754 = vmatmul.mubr.msk.f32.vlgmr.msra.gmra.mrb[2].mxu1 %vm476_vm4, %v3588_v60  ;;  %v2149_v13 = vpop.permute.xlu1 %2148 }
 0x401   : > { %3757 = vmatpush3.msk.msra.mxu1 %vm4534_vm15, %v1704_v59  ;;  %3758 = vmatprep.mubr.msk.f32.mxu1 %vm476_vm4, %v3592_v61  ;;  %v2243_v9 = vpop.permute.xlu0 %2242 }
 0x402   : > { %3761 = vmatprep.subr.mxu1 %v4486_v35 }
 0x408   : > { %3759 = vmatmul.mubr.msk.f32.vlgmr.msra.gmra.mrb[2].mxu1 %vm476_vm4, %v3593_v62 }
 0x409   : > { %3762 = vmatpush3.msra.mxu1 %v4486_v35  ;;  %3763 = vmatprep.mubr.msk.f32.mxu1 %vm476_vm4, %v3597_v63  ;;  %v2265_v35 = vld [vmem:[%s4991_s10 + $0x58] sm:$0xff] }
 0x40a   : > { %3766 = vmatprep.subr.msk.mxu1 %vm4544_vm13, %v1880_v0  ;;  %v3826_v37 = vpack.c.bf16 %v2265_v35, %v2263_v34 }
 0x410   : > { %3764 = vmatmul.mubr.msk.f32.vlgmr.msra.gmra.mrb[2].mxu1 %vm476_vm4, %v3598_v2  ;;  %v2906_v2 = vld [vmem:[#allocation2 + $0x18] sm:$0xff] }
 0x411   : > { %3767 = vmatpush3.msk.msra.mxu1 %vm4544_vm13, %v1880_v0  ;;  %3768 = vmatprep.mubr.msk.f32.mxu1 %vm476_vm4, %v3601_v3  ;;  %v2248_v52 = vpop.permute.xlu1 %2247 }
 0x412   : > { %3771 = vmatprep.subr.msk.mxu1 %vm4534_vm15, %v1970_v4 }
 0x418   : > { %3769 = vmatmul.mubr.msk.f32.vlgmr.msra.gmra.mrb[2].mxu1 %vm476_vm4, %v3602_v5  ;;  %v3383_v5 = vld [vmem:[#allocation3] sm:$0x1] }
 0x419   : > { %3772 = vmatpush3.msk.msra.mxu1 %vm4534_vm15, %v1970_v4  ;;  %3773 = vmatprep.mubr.msk.f32.mxu1 %vm476_vm4, %v3606_v6  ;;  %v3372_v4 = vld [vmem:[%s4987_s6] sm:$0xff]  ;;  %v3969_v6 = vpop.permute.xlu0 %3968  ;;  %vm5022_vm15 = vmmov %vm5021_vm2 }
 0x41a   : > { %3776 = vmatprep.subr.mxu1 %v2063_v10 }
 0x420   : > { %3774 = vmatmul.mubr.msk.f32.vlgmr.msra.gmra.mrb[2].mxu1 %vm476_vm4, %v3607_v11  ;;  %v2436_v11 = vpop.permute.xlu0 %2435 }
 0x421   : > { %3777 = vmatpush3.msra.mxu1 %v2063_v10  ;;  %3778 = vmatprep.mubr.msk.f32.mxu1 %vm476_vm4, %v3611_v12  ;;  %v2434_v10 = vpop.permute.xlu1 %2433 }
 0x422   : > { %3781 = vmatprep.subr.msk.mxu1 %vm4544_vm13, %v2149_v13 }
 0x425   : > { %v2432_v12 = vpop.permute.xlu1 %2431 }
 0x428   : > { %3779 = vmatmul.mubr.msk.f32.vlgmr.msra.gmra.mrb[2].mxu1 %vm476_vm4, %v3612_v17 }
 0x429   : > { %3782 = vmatpush3.msk.msra.mxu1 %vm4544_vm13, %v2149_v13  ;;  %3783 = vmatprep.mubr.msk.f32.mxu1 %vm476_vm4, %v3615_v18  ;;  %v3974_v13 = vpop.permute.xlu0 %3973  ;;  %v4766_v15 = vpop.permute.xlu1 %2394  ;;  %vm2449_vm13 = vcmask 195584  }
 0x42a   : > { %3819 = vmatprep.subr.bf16.mxu1 %v3818_v21  ;;  %v3976_v46 = vunpack.i.h.bf16 %v3974_v13 }
 0x42d   : > { %v2393_v16 = vpop.permute.xlu1 %2392 }
 0x430   : > { %3784 = vmatmul.mubr.msk.f32.vlgmr.msra.gmra.mrb[2].mxu1 %vm476_vm4, %v3616_v27  ;;  %v3971_v27 = vunpack.i.h.bf16 %v3969_v6 }
 0x431   : > { %3821 = vmatpush1.bf16.msra.mxu1 %v3820_v29  ;;  %2340 = vmatprep.mubr.f32.mxu1 %v4095_v1  ;;  %v4770_v18 = vpop.permute.xlu1 %2612  ;;  %v3970_v29 = vunpack.i.l.bf16 %v3969_v6 }
 0x432   : > { %3823 = vmatprep.subr.bf16.mxu1 %v3822_v30 }
 0x435   : > { %3825 = vmatpush1.bf16.msra.mxu1 %v3824_v36 }
 0x436   : > { %3827 = vmatprep.subr.bf16.mxu1 %v3826_v37 }
 0x439   : > { %3829 = vmatpush1.bf16.msra.mxu1 %v3828_v42 }
 0x43a   : > { %3831 = vmatprep.subr.bf16.mxu1 %v3830_v45  ;;  %v2442_v45 = vsel %vm471_vm3, %v2434_v10, %v2436_v11 }
 0x43d   : > { %3833 = vmatpush1.bf16.msra.mxu1 %v3832_v48 }
 0x503   : > { %v3785_v49 = vpop.f32.mrb[2].mxu1 }
 0x504   : > { %v2227_v50 = vpop.f32.mrb[3].mxu1  ;;  %v2251_v53 = vadd.f32 %v3785_v49, %v2248_v52  ;;  %v3975_v49 = vunpack.i.l.bf16 %v3974_v13  ;;  %v2441_v52 = vsel %vm471_vm3, %v2432_v12, %v2434_v10 }
 0x505   : > { %v2250_v51 = vadd.f32 %v2243_v9, %v2227_v50 }
 0x506   : > { %v2253_v55 = vmax.f32 %v2251_v53, 0.0 }
 0x507   : > { %v2252_v54 = vmax.f32 %v2250_v51, 0.0  ;;  %v3622_v51 = vld [vmem:[%s4986_s5 + $0x8] sm:$0xff] }
 0x509   : > { %3620 = vmatmul.mubr.msk.f32.vlgmr.msra.gmra.mrb[4].mxu1 %vm1415_vm0, %v2252_v54 }
 0x50a   : > { %2346 = vmatprep.mubr.f32.mxu1 %v4095_v1 }
 0x50d   : > { %3621 = vmatmul.mubr.msk.f32.gmra.mrb[6].mxu1 %vm1415_vm0, %v2253_v55  ;;  %vm4831_vm0 = vmpackc.low %vm4282_vm8, %vm4282_vm8 }
 0x50e   : > { %3460 = vmatprep.mubr.f32.mxu1 %v4095_v1 }
 0x5dc   : > { %v4686_v56 = vpop.f32.mrb[4].mxu1 }
 0x5dd   : > { %2353 = vst [vmem:[#allocation2 + $0x8] sm:$0xff] %v4686_v56  ;;  %v4689_v57 = vpop.f32.mrb[5].mxu1 }
 0x5de   : > { %v3982_v58 = vpack.i.bf16 %v4689_v57, %v4686_v56  ;;  %v4022_v3 = vpack.i.bf16 %v2906_v2, %v4689_v57 }
 0x5e0   : > { %v4693_v59 = vpop.f32.mrb[6].mxu1  ;;  %3983 = vrot.lane.b32.xlu0 %v3982_v58, %s4096_s24 }
 0x5e1   : > { %v4696_v60 = vpop.f32.mrb[7].mxu1  ;;  %v4027_v61 = vpack.i.bf16 %v4693_v59, %v4686_v56  ;;  %v3858_v62 = vpack.c.bf16 %v4693_v59, %v4686_v56 }
 0x5e2   : > { %v3997_v63 = vpack.i.bf16 %v4696_v60, %v4693_v59  ;;  %v3856_v0 = vpack.c.bf16 %v4696_v60, %v4689_v57  ;;  %v3647_v57 = vld [vmem:[%s4986_s5 + $0x20] sm:$0xff] }
 0x5e4   : > { %2614 = vrot.lane.b32.xlu0 %v4383_v19, %s4098_s26  ;;  %3998 = vrot.lane.b32.xlu1 %v3997_v63, %s4096_s24 }
 0x5e8   : > { %3988 = vrot.lane.b32.xlu0 %v3982_v58, %s4097_s25  ;;  %2610 = vrot.lane.b32.xlu1 %v4516_v41, %s4098_s26 }
 0x5ec   : > { %3993 = vrot.lane.b32.xlu0 %v3982_v58, %s4098_s26  ;;  %4013 = vrot.lane.b32.xlu1 %v3997_v63, %s4097_s25 }
 0x5f0   : > { %4003 = vrot.lane.b32.xlu0 %v3982_v58, %s4099_s27  ;;  %2726 = vrot.lane.b32.xlu1 %v4372_v14, %s4099_s27 }
 0x5f4   : > { %4008 = vrot.lane.b32.xlu0 %v4497_v39, %s4099_s27  ;;  %4018 = vrot.lane.b32.xlu1 %v3997_v63, %s4098_s26  ;;  %v2909_v39 = vld [vmem:[#allocation2 + $0x38] sm:$0xff] }
 0x5f8   : > { %2728 = vrot.lane.b32.xlu0 %v4383_v19, %s4099_s27  ;;  %2724 = vrot.lane.b32.xlu1 %v4516_v41, %s4099_s27  ;;  %v4047_v41 = vpack.i.bf16 %v2909_v39, %v4696_v60 }
 0x5fc   : > { %4023 = vrot.lane.b32.xlu0 %v4022_v3, %s4100_s28  ;;  %4033 = vrot.lane.b32.xlu1 %v3997_v63, %s4099_s27 }
 0x600   : > { %4028 = vrot.lane.b32.xlu0 %v4027_v61, %s4100_s28  ;;  %2936 = vrot.lane.b32.xlu1 %v4383_v19, %s4100_s28 }
 0x604   : > { %2938 = vrot.lane.b32.xlu0 %v4361_v7, %s4100_s28  ;;  %2934 = vrot.lane.b32.xlu1 %v4372_v14, %s4100_s28 }
 0x608   : > { %4038 = vrot.lane.b32.xlu0 %v4022_v3, %s4101_s29  ;;  %3050 = vrot.lane.b32.xlu1 %v4383_v19, %s4101_s29 }
 0x60c   : > { %4043 = vrot.lane.b32.xlu0 %v4027_v61, %s4101_s29  ;;  %4048 = vrot.lane.b32.xlu1 %v4047_v41, %s4100_s28  ;;  %s3550_s28 = sshll.u32 %s5028_s20, 1 }
 0x610   : > { %3052 = vrot.lane.b32.xlu0 %v4361_v7, %s4101_s29  ;;  %3048 = vrot.lane.b32.xlu1 %v4372_v14, %s4101_s29 }
 0x614   : > { %4053 = vrot.lane.b32.xlu0 %v4022_v3, %s4102_s30  ;;  %4063 = vrot.lane.b32.xlu1 %v4047_v41, %s4101_s29 }
 0x618   : > { %4058 = vrot.lane.b32.xlu0 %v4027_v61, %s4102_s30  ;;  %3166 = vrot.lane.b32.xlu1 %v4383_v19, %s4102_s30 }
 0x61c   : > { %3168 = vrot.lane.b32.xlu0 %v4361_v7, %s4102_s30  ;;  %4068 = vrot.lane.b32.xlu1 %v4047_v41, %s4102_s30 }
 0x620   : > { %4073 = vrot.lane.b32.xlu0 %v4022_v3, %s4103_s12  ;;  %3164 = vrot.lane.b32.xlu1 %v4372_v14, %s4102_s30 }
 0x624   : > { %4078 = vrot.lane.b32.xlu0 %v4027_v61, %s4103_s12  ;;  %4083 = vrot.lane.b32.xlu1 %v4047_v41, %s4103_s12  ;;  %v3657_v61 = vld [vmem:[%s4986_s5 + $0x30] sm:$0xff] }
 0x628   : > { %3274 = vrot.lane.b32.xlu0 %v4361_v7, %s4103_s12  ;;  %3272 = vrot.lane.b32.xlu1 %v4383_v19, %s4103_s12  ;;  %v2397_v7 = vpop.permute.xlu0 %2396 }
 0x62c   : > { %3375 = vperm.xlu0 %3955, %v3372_v4   ;;  %3270 = vrot.lane.b32.xlu1 %v4372_v14, %s4103_s12  ;;  %v4768_v17 = vpop.permute.xlu0 %3978  ;;  %v2403_v4 = vsel %vm434_vm1, %v4766_v15, %v2397_v7  ;;  %v2416_v7 = vld [vmem:[%s4986_s5] sm:$0xff]  ;;  %s386_s12 = scalar_lea.vmem %s4992_s11, %s3550_s28 }
 0x62d   : > { %v3981_v12 = vunpack.i.h.bf16 %v4768_v17  ;;  %v3980_v13 = vunpack.i.l.bf16 %v4768_v17 }
 0x630   : > { %3386 = vperm.xlu1 %3966, %v3383_v5  }
 0x652   : > { %v3984_v21 = vpop.permute.xlu0 %3983 }
 0x653   : > { %v3986_v22 = vunpack.i.h.bf16 %v3984_v21  ;;  %v3985_v24 = vunpack.i.l.bf16 %v3984_v21 }
 0x655   : > { %v2437_v33 = vsel %vm471_vm3, %v3970_v29, %v3985_v24  ;;  %v2438_v35 = vsel %vm471_vm3, %v3985_v24, %v3986_v22  ;;  %v2402_v24 = vsel %vm434_vm1, %v2393_v16, %v4766_v15 }
 0x656   : > { %v4772_v25 = vpop.permute.xlu0 %2614  ;;  %v3999_v26 = vpop.permute.xlu1 %3998 }
 0x657   : > { %v4001_v30 = vunpack.i.h.bf16 %v3999_v26  ;;  %v4000_v32 = vunpack.i.l.bf16 %v3999_v26 }
 0x659   : > { %v2439_v34 = vsel %vm471_vm3, %v3971_v27, %v4000_v32  ;;  %v2440_v36 = vsel %vm471_vm3, %v4000_v32, %v4001_v30  ;;  %vm4802_vm3 = vmpackc.low %vm4269_vm6, %vm4269_vm6 }
 0x65a   : > { %v3836_v37 = vpack.c.bf16 %v2439_v34, %v2437_v33  ;;  %v3989_v38 = vpop.permute.xlu0 %3988  ;;  %v4778_v40 = vpop.permute.xlu1 %2610  ;;  %v3834_v42 = vpack.c.bf16 %v2440_v36, %v2438_v35  ;;  %v2621_v35 = vsel %vm635_vm7, %v4770_v18, %v4772_v25 }
 0x65b   : > { %v3991_v43 = vunpack.i.h.bf16 %v3989_v38  ;;  %v3990_v44 = vunpack.i.l.bf16 %v3989_v38  ;;  %v2620_v25 = vsel %vm635_vm7, %v4778_v40, %v4770_v18 }
 0x65c   : > { %3835 = vmatprep.subr.bf16.mxu0 %v3834_v42 }
 0x65d   : > { %3837 = vmatpush1.bf16.msra.mxu0 %v3836_v37  ;;  %v2398_v53 = vsel %vm434_vm1, %v3975_v49, %v3990_v44  ;;  %v2399_v54 = vsel %vm434_vm1, %v3990_v44, %v3991_v43 }
 0x65e   : > { %v3994_v47 = vpop.permute.xlu0 %3993  ;;  %v4014_v48 = vpop.permute.xlu1 %4013  ;;  %2457 = vmatprep.subr.mxu0 %v2442_v45 }
 0x65f   : > { %v4016_v9 = vunpack.i.h.bf16 %v4014_v48  ;;  %v4015_v50 = vunpack.i.l.bf16 %v4014_v48  ;;  %v3996_v5 = vunpack.i.h.bf16 %v3994_v47  ;;  %v3995_v6 = vunpack.i.l.bf16 %v3994_v47  ;;  %v3631_v47 = vld [vmem:[%s4986_s5 + $0x10] sm:$0xff] }
 0x661   : > { %v2400_v55 = vsel %vm434_vm1, %v3976_v46, %v4015_v50  ;;  %v2401_v58 = vsel %vm434_vm1, %v4015_v50, %v4016_v9  ;;  %2458 = vmatpush1.msra.mxu0 %v2441_v52  ;;  %v2616_v26 = vsel %vm635_vm7, %v3980_v13, %v3995_v6  ;;  %v2617_v27 = vsel %vm635_vm7, %v3995_v6, %v3996_v5  ;;  %vm4839_vm1 = vmpackc.low %vm4287_vm9, %vm4287_vm9 }
 0x662   : > { %v3838_v63 = vpack.c.bf16 %v2401_v58, %v2399_v54  ;;  %v3841_v2 = vpack.c.bf16 %v2400_v55, %v2398_v53  ;;  %v4004_v3 = vpop.permute.xlu0 %4003  ;;  %v4796_v39 = vpop.permute.xlu1 %2726  ;;  %3623 = vmatmul.mubr.msk.f32.vlgmr.msra.gmra.mrb[2].mxu0 %vm2449_vm13, %v3622_v51  ;;  %v3639_v58 = vld [vmem:[%s4986_s5 + $0x18] sm:$0xff] }
 0x663   : > { %2591 = vmatprep.mubr.f32.mxu0 %v4095_v1  ;;  %v4006_v36 = vunpack.i.h.bf16 %v4004_v3  ;;  %v4005_v37 = vunpack.i.l.bf16 %v4004_v3 }
 0x664   : > { %3840 = vmatprep.subr.msk.bf16.mxu0 %vm4792_vm14, %v3838_v63 }
 0x665   : > { %3843 = vmatpush1.bf16.msk.msra.mxu0 %vm4802_vm3, %v3841_v2  ;;  %v2731_v48 = vsel %vm726_vm10, %v4005_v37, %v4006_v36 }
 0x666   : > { %v4009_v10 = vpop.permute.xlu0 %4008  ;;  %v4019_v11 = vpop.permute.xlu1 %4018  ;;  %3628 = vmatprep.subr.msk.mxu0 %vm4263_vm5, %v2403_v4 }
 0x667   : > { %v4021_v21 = vunpack.i.h.bf16 %v4019_v11  ;;  %v4020_v22 = vunpack.i.l.bf16 %v4019_v11  ;;  %v4010_v38 = vunpack.i.l.bf16 %v4009_v10  ;;  %v4011_v44 = vunpack.i.h.bf16 %v4009_v10 }
 0x669   : > { %v2618_v29 = vsel %vm635_vm7, %v3981_v12, %v4020_v22  ;;  %v2619_v30 = vsel %vm635_vm7, %v4020_v22, %v4021_v21  ;;  %3629 = vmatpush1.msk.msra.mxu0 %vm4269_vm6, %v2402_v24  ;;  %v2730_v49 = vsel %vm726_vm10, %v4010_v38, %v4005_v37  ;;  %vm5015_vm7 = vcmask 916480  }
 0x66a   : > { %v3844_v32 = vpack.c.bf16 %v2619_v30, %v2617_v27  ;;  %v3847_v15 = vpack.c.bf16 %v2618_v29, %v2616_v26  ;;  %v2729_v16 = vpop.permute.xlu0 %2728  ;;  %v2725_v33 = vpop.permute.xlu1 %2724  ;;  %3630 = vmatmul.mubr.msk.f32.vlgmr.msra.gmra.mrb[2].mxu0 %vm2449_vm13, %v2416_v7 }
 0x66b   : > { %2703 = vmatprep.mubr.f32.mxu0 %v4095_v1  ;;  %v2735_v18 = vsel %vm726_vm10, %v4796_v39, %v2729_v16  ;;  %v2734_v63 = vsel %vm726_vm10, %v2725_v33, %v4796_v39  ;;  %v3649_v16 = vld [vmem:[%s4986_s5 + $0x28] sm:$0xff] }
 0x66c   : > { %3846 = vmatprep.subr.msk.bf16.mxu0 %vm4831_vm0, %v3844_v32 }
 0x66d   : > { %3849 = vmatpush1.bf16.msk.msra.mxu0 %vm4839_vm1, %v3847_v15 }
 0x66e   : > { %v4024_v42 = vpop.permute.xlu0 %4023  ;;  %v4034_v43 = vpop.permute.xlu1 %4033  ;;  %3636 = vmatprep.subr.msk.mxu0 %vm4282_vm8, %v2621_v35 }
 0x66f   : > { %v4036_v45 = vunpack.i.h.bf16 %v4034_v43  ;;  %v4035_v46 = vunpack.i.l.bf16 %v4034_v43  ;;  %v4026_v39 = vunpack.i.h.bf16 %v4024_v42  ;;  %v4025_v4 = vunpack.i.l.bf16 %v4024_v42 }
 0x671   : > { %v2732_v9 = vsel %vm726_vm10, %v4011_v44, %v4035_v46  ;;  %v2733_v50 = vsel %vm726_vm10, %v4035_v46, %v4036_v45  ;;  %3637 = vmatpush1.msk.msra.mxu0 %vm4287_vm9, %v2620_v25  ;;  %v2941_v56 = vsel %vm901_vm11, %v4025_v4, %v4026_v39  ;;  %vm5016_vm10 = vmmov %vm5015_vm7 }
 0x672   : > { %v3850_v51 = vpack.c.bf16 %v2733_v50, %v2731_v48  ;;  %v3853_v52 = vpack.c.bf16 %v2732_v9, %v2730_v49  ;;  %v4029_v53 = vpop.permute.xlu0 %4028  ;;  %v2937_v54 = vpop.permute.xlu1 %2936  ;;  %3638 = vmatmul.mubr.msk.f32.vlgmr.msra.gmra.mrb[2].mxu0 %vm2449_vm13, %v3631_v47 }
 0x673   : > { %2817 = vmatprep.mubr.f32.mxu0 %v4095_v1  ;;  %v4030_v5 = vunpack.i.l.bf16 %v4029_v53  ;;  %v4031_v11 = vunpack.i.h.bf16 %v4029_v53 }
 0x674   : > { %3852 = vmatprep.subr.msk.bf16.mxu0 %vm4792_vm14, %v3850_v51 }
 0x675   : > { %3855 = vmatpush1.bf16.msk.msra.mxu0 %vm4802_vm3, %v3853_v52  ;;  %v2940_v59 = vsel %vm901_vm11, %v4030_v5, %v4025_v4 }
 0x676   : > { %v2939_v40 = vpop.permute.xlu0 %2938  ;;  %v2935_v55 = vpop.permute.xlu1 %2934  ;;  %3644 = vmatprep.subr.msk.mxu0 %vm4263_vm5, %v2735_v18 }
 0x677   : > { %v2944_v33 = vsel %vm901_vm11, %v2935_v55, %v2937_v54 }
 0x679   : > { %3645 = vmatpush1.msk.msra.mxu0 %vm4269_vm6, %v2734_v63 }
 0x67a   : > { %v4039_v2 = vpop.permute.xlu0 %4038  ;;  %v4882_v3 = vpop.permute.xlu1 %3050  ;;  %3646 = vmatmul.mubr.msk.f32.vlgmr.msra.gmra.mrb[2].mxu0 %vm2449_vm13, %v3639_v58  ;;  %3857 = vmatprep.subr.bf16.mxu0 %v3856_v0 }
 0x67b   : > { %3859 = vmatpush1.bf16.msra.mxu0 %v3858_v62  ;;  %2895 = vmatprep.mubr.f32.mxu0 %v4095_v1  ;;  %v4041_v7 = vunpack.i.h.bf16 %v4039_v2  ;;  %v4040_v24 = vunpack.i.l.bf16 %v4039_v2 }
 0x67c   : > { %2835 = vmatprep.subr.mxu0 %v4383_v19 }
 0x67d   : > { %v3055_v35 = vsel %vm992_vm12, %v4040_v24, %v4041_v7 }
 0x67e   : > { %v4044_v6 = vpop.permute.xlu0 %4043  ;;  %v4049_v10 = vpop.permute.xlu1 %4048 }
 0x67f   : > { %v4051_v12 = vunpack.i.h.bf16 %v4049_v10  ;;  %v4050_v13 = vunpack.i.l.bf16 %v4049_v10  ;;  %2836 = vmatpush1.msra.mxu0 %v4372_v14  ;;  %v2945_v14 = vsel %vm901_vm11, %v2937_v54, %v2939_v40  ;;  %v4045_v26 = vunpack.i.l.bf16 %v4044_v6 }
 0x680   : > { %v4046_v30 = vunpack.i.h.bf16 %v4044_v6 }
 0x681   : > { %v2942_v19 = vsel %vm901_vm11, %v4031_v11, %v4050_v13  ;;  %v2943_v60 = vsel %vm901_vm11, %v4050_v13, %v4051_v12  ;;  %v3054_v36 = vsel %vm992_vm12, %v4045_v26, %v4040_v24  ;;  %vm5017_vm11 = vmmov %vm5015_vm7  ;;  %v3665_v12 = vld [vmem:[%s4986_s5 + $0x38] sm:$0xff]  ;;  %v3667_v24 = vld [vmem:[%s4986_s5 + $0x40] sm:$0xff] }
 0x682   : > { %v3860_v62 = vpack.c.bf16 %v2943_v60, %v2941_v56  ;;  %v3863_v0 = vpack.c.bf16 %v2942_v19, %v2940_v59  ;;  %v3053_v21 = vpop.permute.xlu0 %3052  ;;  %v3049_v22 = vpop.permute.xlu1 %3048  ;;  %3648 = vmatmul.mubr.msk.f32.vlgmr.msra.gmra.mrb[2].mxu0 %vm2449_vm13, %v3647_v57 }
 0x683   : > { %3027 = vmatprep.mubr.f32.mxu0 %v4095_v1  ;;  %v3059_v46 = vsel %vm992_vm12, %v4882_v3, %v3053_v21  ;;  %v3058_v53 = vsel %vm992_vm12, %v3049_v22, %v4882_v3 }
 0x684   : > { %3862 = vmatprep.subr.msk.bf16.mxu0 %vm4831_vm0, %v3860_v62 }
 0x685   : > { %3865 = vmatpush1.bf16.msk.msra.mxu0 %vm4839_vm1, %v3863_v0 }
 0x686   : > { %v4054_v27 = vpop.permute.xlu0 %4053  ;;  %v4064_v29 = vpop.permute.xlu1 %4063  ;;  %3654 = vmatprep.subr.msk.mxu0 %vm4282_vm8, %v2945_v14 }
 0x687   : > { %v4066_v32 = vunpack.i.h.bf16 %v4064_v29  ;;  %v4065_v15 = vunpack.i.l.bf16 %v4064_v29  ;;  %v4056_v47 = vunpack.i.h.bf16 %v4054_v27  ;;  %v4055_v25 = vunpack.i.l.bf16 %v4054_v27 }
 0x689   : > { %v3056_v37 = vsel %vm992_vm12, %v4046_v30, %v4065_v15  ;;  %v3057_v38 = vsel %vm992_vm12, %v4065_v15, %v4066_v32  ;;  %3655 = vmatpush1.msk.msra.mxu0 %vm4287_vm9, %v2944_v33  ;;  %v3171_v20 = vsel %vm5017_vm11, %v4055_v25, %v4056_v47  ;;  %v4111_v32 = vmov 1966171168  }
 0x68a   : > { %v3866_v42 = vpack.c.bf16 %v3057_v38, %v3055_v35  ;;  %v3869_v43 = vpack.c.bf16 %v3056_v37, %v3054_v36  ;;  %v4059_v44 = vpop.permute.xlu0 %4058  ;;  %v3167_v45 = vpop.permute.xlu1 %3166  ;;  %3656 = vmatmul.mubr.msk.f32.vlgmr.msra.gmra.mrb[2].mxu0 %vm2449_vm13, %v3649_v16  ;;  %v3471_v15 = vunpack.c.l.s4 %v4111_v32  ;;  %v3391_v16 = vsub.s32 0, %v3390_v31 }
 0x68b   : > { %3141 = vmatprep.mubr.f32.mxu0 %v4095_v1  ;;  %v4060_v48 = vunpack.i.l.bf16 %v4059_v44  ;;  %v4061_v50 = vunpack.i.h.bf16 %v4059_v44 }
 0x68c   : > { %3868 = vmatprep.subr.msk.bf16.mxu0 %vm4792_vm14, %v3866_v42  ;;  %vm5023_vm14 = vmmov %vm5021_vm2  ;;  %v3472_v35 = vunpack.c.0.s8 %v3471_v15 }
 0x68d   : > { %3871 = vmatpush1.bf16.msk.msra.mxu0 %vm4802_vm3, %v3869_v43  ;;  %v3170_v54 = vsel %vm5015_vm7, %v4060_v48, %v4055_v25  ;;  %vm5024_vm3 = vmmov %vm5021_vm2 }
 0x68e   : > { %v3169_v49 = vpop.permute.xlu0 %3168  ;;  %v4069_v9 = vpop.permute.xlu1 %4068  ;;  %3662 = vmatprep.subr.msk.mxu0 %vm4263_vm5, %v3059_v46  ;;  %vm5018_vm5 = vmmov %vm5015_vm7  ;;  %v3475_v44 = vsub.s32 %v3472_v35, %v3390_v31 }
 0x68f   : > { %v4071_v51 = vunpack.i.h.bf16 %v4069_v9  ;;  %v4070_v52 = vunpack.i.l.bf16 %v4069_v9  ;;  %vm5019_vm12 = vmmov %vm5018_vm5 }
 0x690   : > { %v3175_v39 = vsel %vm5019_vm12, %v3167_v45, %v3169_v49  ;;  %vm5025_vm7 = vmmov %vm5021_vm2 }
 0x691   : > { %v3172_v41 = vsel %vm5016_vm10, %v4061_v50, %v4070_v52  ;;  %3663 = vmatpush1.msk.msra.mxu0 %vm4269_vm6, %v3058_v53  ;;  %v3173_v18 = vsel %vm5018_vm5, %v4070_v52, %v4071_v51  ;;  %vm5020_vm6 = vmmov %vm5018_vm5 }
 0x692   : > { %v3874_v40 = vpack.c.bf16 %v3172_v41, %v3170_v54  ;;  %v4074_v55 = vpop.permute.xlu0 %4073  ;;  %v3165_v58 = vpop.permute.xlu1 %3164  ;;  %3664 = vmatmul.mubr.msk.f32.vlgmr.msra.gmra.mrb[2].mxu0 %vm2449_vm13, %v3657_v61  ;;  %v3872_v63 = vpack.c.bf16 %v3173_v18, %v3171_v20  ;;  %vm5026_vm10 = vmmov %vm5021_vm2 }
 0x693   : > { %3249 = vmatprep.mubr.f32.mxu0 %v4095_v1  ;;  %v4076_v2 = vunpack.i.h.bf16 %v4074_v55  ;;  %v4075_v3 = vunpack.i.l.bf16 %v4074_v55  ;;  %v3174_v13 = vsel %vm5020_vm6, %v3165_v58, %v3167_v45 }
 0x694   : > { %3873 = vmatprep.subr.bf16.mxu0 %v3872_v63 }
 0x695   : > { %3875 = vmatpush1.bf16.msra.mxu0 %v3874_v40  ;;  %v3277_v57 = vsel %vm5021_vm2, %v4075_v3, %v4076_v2 }
 0x696   : > { %v4079_v23 = vpop.permute.xlu0 %4078  ;;  %v4084_v4 = vpop.permute.xlu1 %4083  ;;  %3189 = vmatprep.subr.mxu0 %v3175_v39 }
 0x697   : > { %v4081_v5 = vunpack.i.h.bf16 %v4079_v23  ;;  %v4080_v6 = vunpack.i.l.bf16 %v4079_v23  ;;  %v4086_v10 = vunpack.i.h.bf16 %v4084_v4  ;;  %v4085_v11 = vunpack.i.l.bf16 %v4084_v4 }
 0x699   : > { %v3276_v56 = vsel %vm5022_vm15, %v4080_v6, %v4075_v3  ;;  %v3278_v59 = vsel %vm5023_vm14, %v4081_v5, %v4085_v11  ;;  %v3279_v19 = vsel %vm5024_vm3, %v4085_v11, %v4086_v10  ;;  %3190 = vmatpush1.msra.mxu0 %v3174_v13 }
 0x69a   : > { %v3876_v60 = vpack.c.bf16 %v3279_v19, %v3277_v57  ;;  %v3879_v62 = vpack.c.bf16 %v3278_v59, %v3276_v56  ;;  %v3275_v0 = vpop.permute.xlu0 %3274  ;;  %v3273_v21 = vpop.permute.xlu1 %3272  ;;  %3666 = vmatmul.mubr.msk.f32.vlgmr.msra.gmra.mrb[2].mxu0 %vm2449_vm13, %v3665_v12 }
 0x69b   : > { %3363 = vmatprep.mubr.f32.mxu0 %v4095_v1  ;;  %v3281_v22 = vsel %vm5025_vm7, %v3273_v21, %v3275_v0 }
 0x69c   : > { %3878 = vmatprep.subr.msk.bf16.mxu0 %vm4831_vm0, %v3876_v60 }
 0x69d   : > { %3881 = vmatpush1.bf16.msk.msra.mxu0 %vm4839_vm1, %v3879_v62 }
 0x69e   : > { %v3271_v14 = vpop.permute.xlu1 %3270  ;;  %3672 = vmatprep.subr.msk.mxu0 %vm4282_vm8, %v3281_v22 }
 0x69f   : > { %v3280_v7 = vsel %vm5026_vm10, %v3271_v14, %v3273_v21 }
 0x6a1   : > { %3673 = vmatpush1.msk.msra.mxu0 %vm4287_vm9, %v3280_v7 }
 0x6a2   : > { %3674 = vmatmul.mubr.msk.f32.vlgmr.msra.gmra.mrb[2].mxu0 %vm2449_vm13, %v3667_v24 }
 0x6ab   : > { %v3376_v1 = vpop.permute.xlu0 %3375 }
 0x6af   : > { %v3387_v33 = vpop.permute.xlu1 %3386 }
 0x6b0   : > { %v3392_v36 = vrot.slane %v3387_v33, %v3391_v16 }
 0x775   : > { %v3365_v17 = vpop.f32.mrb[2].mxu0 }
 0x776   : > { %v3378_v26 = vadd.f32 %v3376_v1, %v3365_v17  ;;  %v3367_v34 = vpop.f32.mrb[3].mxu0 }
 0x777   : > { %v3379_v27 = vadd.f32 %v3376_v1, %v3367_v34 }
 0x778   : > { %v3380_v30 = vmax.f32 %v3378_v26, 0.0 }
 0x779   : > { %v3381_v29 = vmax.f32 %v3379_v27, 0.0 }
 0x77b   : > { %3396 = vmatprep.subr.mxu1 %v3381_v29 }
 0x77c   : > { %3397 = vmatpush1.msra.mxu1 %v3380_v30 }
 0x77d   : > { %3675 = vmatmul.mubr.msk.f32.vlgmr.msra.gmra.mrb[8].mxu1 %vm476_vm4, %v3382_v28  ;;  %vm3487_vm4 = vcmp.lt.s32.totalorder %v387_v8, 256 }
 0x850   : > { %v3462_v37 = vpop.f32.mrb[8].mxu1 }
 0x851   : > { %v3463_v38 = vadd.f32 %v3462_v37, %v3392_v36  ;;  %v3464_v42 = vpop.f32.mrb[9].mxu1 }
 0x852   : > { %v3465_v43 = vadd.f32 %v3464_v42, %v3392_v36 }
 0x854   : > { %v3469_v45 = vcombine.low %v3463_v38, %v3465_v43 }
 0x856   : > { %v3476_v46 = vrot.slane %v3469_v45, %v3475_v44 }
 0x858   : > { %v3483_v47 = vrot.slane %v3476_v46, %v3475_v44 }
 0x85a   : > { %3489 = vst.msk [vmem:[%s386_s12] sm:$0x3] %vm3487_vm4, %v3483_v47 }
 0x85b PF: > { %s23_s19 = sadd.s32 1, %s4093_s19  }
 0x85c   : > { %p20_p4 = scmp.ge.s32.totalorder %s23_s19, 4  }
 0x85e   :  { %22 = sbr.rel (!%p20_p4) target bundleno = 3 (0x3), region = 118 }

</bundles_post_ra>
